<compile_context>
chip_gen: v7x
topology: tpu7x:2x2x1
jax: 0.10.0
libtpu: 0.0.40
codegen_flags: <defaults>
</compile_context>

<pallas_src>
import functools

import jax
import jax.numpy as jnp
from jax import lax
from jax.experimental import pallas as pl
from jax.experimental.pallas import tpu as pltpu


_GATE_ORDER = (0, 1, 3, 2)   # PyTorch [i, f, g, o] -> kernel [i, f, o, g]
_LANE = 128
_SUBLANE = 8


def _round_up(x, m):
    return (x + m - 1) // m * m


# ------------------------------ fused kernel ---------------------------------
def _lstm_classifier_kernel(x_ref, w_ih0_ref, w_ih_rest_ref, w_hh_ref, b_ref,
                            cls_w_ref, cls_b_ref, out_ref,
                            h_sc, c_sc, gx_sc, seq_sc,
                            *, hp, num_layers, chunk, seq_len, needs_mask):
    """One (batch_tile, time_chunk) grid step of the full LSTM stack + head.

    x_ref        : (Tc, Bt, INp)        bf16  time-major input chunk (pipelined)
    w_ih0_ref    : (INp, 4Hp)           bf16  layer-0 W_ih^T   (VMEM-resident)
    w_ih_rest_ref: (max(L-1,1), Hp, 4Hp)bf16  layers>=1 W_ih^T (VMEM-resident)
    w_hh_ref     : (L, Hp, 4Hp)         bf16  W_hh^T           (VMEM-resident)
    b_ref        : (L, 1, 4Hp)          f32   b_ih + b_hh      (VMEM-resident)
    cls_w_ref    : (Hp, Cp)             bf16  classifier W^T   (VMEM-resident)
    cls_b_ref    : (1, Cp)              f32   classifier bias  (VMEM-resident)
    out_ref      : (Bt, Cp)             f32   logits (written on last chunk)
    h_sc, c_sc   : (L, Bt, Hp)          f32   recurrent state across chunks
    gx_sc        : (Tc, Bt, 4Hp)        f32   hoisted input projection
    seq_sc       : (Tc, Bt, Hp)         bf16  inter-layer chunk buffer (VMEM)
    """
    ci = pl.program_id(1)
    bt = x_ref.shape[1]

    # Reset recurrent state at the start of each batch tile's time sweep.
    @pl.when(ci == 0)
    def _():
        h_sc[...] = jnp.zeros_like(h_sc)
        c_sc[...] = jnp.zeros_like(c_sc)

    t_base = ci * chunk

    def run_layer(layer, w_hh, emit_seq):
        # Loop-carried (f32) state: one scratch read before, one write after.
        h0 = h_sc[layer]
        c0 = c_sc[layer]

        def step(t, carry):
            h, c = carry
            # Only the recurrent matmul lives inside the serial loop.
            gates = gx_sc[t] + jnp.dot(h.astype(jnp.bfloat16), w_hh,
                                       preferred_element_type=jnp.float32)
            sig = jax.nn.sigmoid(gates[:, : 3 * hp])   # contiguous [i, f, o]
            i_g = sig[:, 0 * hp:1 * hp]
            f_g = sig[:, 1 * hp:2 * hp]
            o_g = sig[:, 2 * hp:3 * hp]
            g_g = jnp.tanh(gates[:, 3 * hp:])          # contiguous g
            c_new = f_g * c + i_g * g_g
            h_new = o_g * jnp.tanh(c_new)
            if needs_mask:
                # Padded tail timesteps must leave the state untouched
                # (zero inputs are NOT an identity step for an LSTM).
                valid = (t_base + t) < seq_len
                h_new = jnp.where(valid, h_new, h)
                c_new = jnp.where(valid, c_new, c)
            if emit_seq:
                seq_sc[t] = h_new.astype(seq_sc.dtype)
            return h_new, c_new

        h_fin, c_fin = lax.fori_loop(0, chunk, step, (h0, c0), unroll=True)
        h_sc[layer] = h_fin
        c_sc[layer] = c_fin
        return h_fin

    # ---- layer 0: hoisted input projection over the whole chunk ----
    x_flat = x_ref[...].reshape(chunk * bt, x_ref.shape[2])
    gx = jnp.dot(x_flat, w_ih0_ref[...], preferred_element_type=jnp.float32)
    gx_sc[...] = (gx + b_ref[0]).reshape(chunk, bt, 4 * hp)
    h_last = run_layer(0, w_hh_ref[0], emit_seq=num_layers > 1)

    # ---- layers 1..L-1: consume previous layer's chunk straight from VMEM ----
    for layer in range(1, num_layers):
        seq_flat = seq_sc[...].reshape(chunk * bt, hp)
        gx = jnp.dot(seq_flat, w_ih_rest_ref[layer - 1],
                     preferred_element_type=jnp.float32)
        gx_sc[...] = (gx + b_ref[layer]).reshape(chunk, bt, 4 * hp)
        h_last = run_layer(layer, w_hh_ref[layer],
                           emit_seq=layer < num_layers - 1)

    # ---- fused classifier, only on the final time chunk ----
    @pl.when(ci == pl.num_programs(1) - 1)
    def _():
        out_ref[...] = (
            jnp.dot(h_last.astype(jnp.bfloat16), cls_w_ref[...],
                    preferred_element_type=jnp.float32)
            + cls_b_ref[...]
        )


# -------------------------- one-time weight preparation -----------------------
def prepare_params(params):
    """Hoisted out of the forward path: gate reorder to [i,f,o,g], pad H/4H/
    input/classes to lanes, transpose for (M,K)@(K,N) MXU matmuls, bf16 cast
    (biases stay f32). Call once; reuse the returned arrays every forward."""
    lstm = params["lstm"]
    n_layers = len(lstm)
    hid = lstm[0][1].shape[1]
    in_dim = lstm[0][0].shape[1]
    n_cls = params["cls_w"].shape[0]

    hp = _round_up(hid, _LANE)
    inp = _round_up(in_dim, _LANE)
    cp = _round_up(n_cls, _LANE)

    def reorder_pad_t(w, in_pad):
        # (4H, X) -> (Xp, 4Hp) bf16, gate order [i, f, o, g]
        blocks = [w[g * hid:(g + 1) * hid] for g in _GATE_ORDER]
        blocks = [jnp.pad(b, ((0, hp - hid), (0, 0))) for b in blocks]
        w_r = jnp.concatenate(blocks, axis=0)                       # (4Hp, X)
        return jnp.pad(w_r.T, ((0, in_pad - w.shape[1]), (0, 0))).astype(jnp.bfloat16)

    def bias_row(b_ih, b_hh):
        s = b_ih + b_hh
        blocks = [jnp.pad(s[g * hid:(g + 1) * hid], (0, hp - hid))
                  for g in _GATE_ORDER]
        return jnp.concatenate(blocks).reshape(1, 4 * hp).astype(jnp.float32)

    w_ih0 = reorder_pad_t(lstm[0][0], inp)                          # (INp, 4Hp)
    if n_layers > 1:
        w_ih_rest = jnp.stack([reorder_pad_t(lstm[l][0], hp)
                               for l in range(1, n_layers)])        # (L-1,Hp,4Hp)
    else:
        w_ih_rest = jnp.zeros((1, hp, 4 * hp), jnp.bfloat16)        # unused dummy
    w_hh = jnp.stack([reorder_pad_t(lstm[l][1], hp)
                      for l in range(n_layers)])                    # (L, Hp, 4Hp)
    bias = jnp.stack([bias_row(lstm[l][2], lstm[l][3])
                      for l in range(n_layers)])                    # (L, 1, 4Hp)

    cls_w = jnp.pad(params["cls_w"].T,
                    ((0, hp - hid), (0, cp - n_cls))).astype(jnp.bfloat16)
    cls_b = jnp.pad(params["cls_b"], (0, cp - n_cls)).reshape(1, cp).astype(jnp.float32)

    return {"w_ih0": w_ih0, "w_ih_rest": w_ih_rest, "w_hh": w_hh, "bias": bias,
            "cls_w": cls_w, "cls_b": cls_b}


def _vmem_bytes_estimate(chunk, bt, inp, hp, cp, n_layers):
    bf16, f32 = 2, 4
    x_chunk = chunk * bt * inp * bf16 * 2                   # double-buffered
    weights = (inp * 4 * hp * bf16
               + max(n_layers - 1, 1) * hp * 4 * hp * bf16
               + n_layers * hp * 4 * hp * bf16
               + n_layers * 4 * hp * f32
               + hp * cp * bf16 + cp * f32)                 # single (resident)
    scratch = (2 * n_layers * bt * hp * f32                 # h, c
               + chunk * bt * 4 * hp * f32                  # gx
               + chunk * bt * hp * bf16)                    # inter-layer seq
    out = bt * cp * f32 * 2
    return int(x_chunk + weights + scratch + out)


# ---------------------------------- forward -----------------------------------
@functools.partial(jax.jit, static_argnames=("num_classes", "time_chunk_cap"))
def lstm_classifier_forward(x, prepped, *, num_classes, time_chunk_cap=32):
    """x: (batch, seq_len, input_size) f32 -> logits (batch, num_classes) f32."""
    bsz, tlen, in_dim = x.shape
    w_ih0 = prepped["w_ih0"]
    w_hh = prepped["w_hh"]
    n_layers, hp = w_hh.shape[0], w_hh.shape[1]
    inp = w_ih0.shape[0]
    cp = prepped["cls_w"].shape[1]

    # Big batch tiles: the grid is a sequential loop, so a large Bt feeds the
    # MXU M-dimension instead of serializing the batch. Keep Bt a multiple of 8.
    batch_tile = min(_round_up(bsz, _SUBLANE), 128)
    bp = _round_up(bsz, batch_tile)

    # Time chunking with masked ragged tail (no degenerate chunk=1 for prime T).
    chunk = max(1, min(time_chunk_cap, tlen))
    tp = _round_up(tlen, chunk)
    needs_mask = tp != tlen

    # bf16 cast BEFORE pad/transpose; zeros in padded lanes keep padded state 0.
    x_tm = jnp.transpose(x.astype(jnp.bfloat16), (1, 0, 2))          # (T, B, F)
    x_tm = jnp.pad(x_tm, ((0, tp - tlen), (0, bp - bsz), (0, inp - in_dim)))

    n_btiles = bp // batch_tile
    n_chunks = tp // chunk

    vmem_limit = int(min(max(
        1.5 * _vmem_bytes_estimate(chunk, batch_tile, inp, hp, cp, n_layers)
        + (4 << 20), 32 << 20), 96 << 20))

    kernel = functools.partial(
        _lstm_classifier_kernel, hp=hp, num_layers=n_layers, chunk=chunk,
        seq_len=tlen, needs_mask=needs_mask)

    def resident():
        # Grid-invariant operand: whole array resident in VMEM, single copy.
        return pl.BlockSpec(memory_space=pltpu.MemorySpace.VMEM)

    logits = pl.pallas_call(
        kernel,
        out_shape=jax.ShapeDtypeStruct((bp, cp), jnp.float32),
        grid_spec=pltpu.PrefetchScalarGridSpec(
            num_scalar_prefetch=0,
            grid=(n_btiles, n_chunks),
            in_specs=[
                pl.BlockSpec((chunk, batch_tile, inp), lambda b, c: (c, b, 0)),
                resident(),   # w_ih0
                resident(),   # w_ih_rest
                resident(),   # w_hh
                resident(),   # bias
                resident(),   # cls_w
                resident(),   # cls_b
            ],
            out_specs=pl.BlockSpec((batch_tile, cp), lambda b, c: (b, 0)),
            scratch_shapes=[
                pltpu.VMEM((n_layers, batch_tile, hp), jnp.float32),      # h
                pltpu.VMEM((n_layers, batch_tile, hp), jnp.float32),      # c
                pltpu.VMEM((chunk, batch_tile, 4 * hp), jnp.float32),     # gx
                pltpu.VMEM((chunk, batch_tile, hp), jnp.bfloat16),        # seq
            ],
        ),
        compiler_params=pltpu.CompilerParams(
            dimension_semantics=("parallel", "arbitrary"),
            vmem_limit_bytes=vmem_limit),
    )(x_tm, prepped["w_ih0"], prepped["w_ih_rest"], prepped["w_hh"],
      prepped["bias"], prepped["cls_w"], prepped["cls_b"])

    return logits[:bsz, :num_classes]


# ----------------------------------- init -------------------------------------
def init_params(key, input_size, hidden_size, num_layers, num_classes):
    """Deterministic init matching PyTorch shapes (U(-1/sqrt(H), 1/sqrt(H)))."""
    bound = 1.0 / (hidden_size ** 0.5)
    lstm_params = []
    for layer in range(num_layers):
        in_dim = input_size if layer == 0 else hidden_size
        key, k1, k2, k3, k4 = jax.random.split(key, 5)
        w_ih = jax.random.uniform(k1, (4 * hidden_size, in_dim), jnp.float32, -bound, bound)
        w_hh = jax.random.uniform(k2, (4 * hidden_size, hidden_size), jnp.float32, -bound, bound)
        b_ih = jax.random.uniform(k3, (4 * hidden_size,), jnp.float32, -bound, bound)
        b_hh = jax.random.uniform(k4, (4 * hidden_size,), jnp.float32, -bound, bound)
        lstm_params.append((w_ih, w_hh, b_ih, b_hh))
    key, k5, k6 = jax.random.split(key, 3)
    cls_w = jax.random.uniform(k5, (num_classes, hidden_size), jnp.float32, -bound, bound)
    cls_b = jax.random.uniform(k6, (num_classes,), jnp.float32, -bound, bound)
    return {"lstm": lstm_params, "cls_w": cls_w, "cls_b": cls_b}


# --------------------------- pure-JAX reference check --------------------------
def _reference_forward(x, params):
    """Pure-JAX reference with the same precision policy as the kernel
    (bf16 matmul operands, f32 accumulation / state), PyTorch gate order,
    no padding — independent of the kernel's layout tricks."""
    h_seq = jnp.transpose(x, (1, 0, 2)).astype(jnp.float32)   # (T, B, F)
    for (w_ih, w_hh, b_ih, b_hh) in params["lstm"]:
        t_len, b_sz, _ = h_seq.shape
        hh = w_hh.shape[1]
        w_ih_bf = w_ih.astype(jnp.bfloat16)
        w_hh_bf = w_hh.astype(jnp.bfloat16)
        bias = (b_ih + b_hh).astype(jnp.float32)
        x_bf = h_seq.astype(jnp.bfloat16)
        h = jnp.zeros((b_sz, hh), jnp.float32)
        c = jnp.zeros((b_sz, hh), jnp.float32)
        outs = []
        for t in range(t_len):
            gates = (
                jnp.dot(x_bf[t], w_ih_bf.T, preferred_element_type=jnp.float32)
                + jnp.dot(h.astype(jnp.bfloat16), w_hh_bf.T,
                          preferred_element_type=jnp.float32)
                + bias
            )
            i = jax.nn.sigmoid(gates[:, 0 * hh:1 * hh])
            f = jax.nn.sigmoid(gates[:, 1 * hh:2 * hh])
            g = jnp.tanh(gates[:, 2 * hh:3 * hh])
            o = jax.nn.sigmoid(gates[:, 3 * hh:4 * hh])
            c = f * c + i * g
            h = o * jnp.tanh(c)
            outs.append(h)
        h_seq = jnp.stack(outs, axis=0)
    last = h_seq[-1].astype(jnp.bfloat16)
    return (jnp.dot(last, params["cls_w"].T.astype(jnp.bfloat16),
                    preferred_element_type=jnp.float32)
            + params["cls_b"])


if __name__ == "__main__":
    batch, seq_len = 2, 8
    input_size, hidden_size, num_layers, num_classes = 16, 32, 2, 4

    key = jax.random.PRNGKey(0)
    key, kx = jax.random.split(key)
    x = jax.random.normal(kx, (batch, seq_len, input_size), jnp.float32)
    params = init_params(key, input_size, hidden_size, num_layers, num_classes)

    prepped = prepare_params(params)        # one-time weight prep (hoisted)
    ref = _reference_forward(x, params)

    # Even time chunks (2 chunks of 4): exercises the streamed recurrence with
    # h/c carried in scratch across grid steps.
    logits = lstm_classifier_forward(x, prepped, num_classes=num_classes,
                                     time_chunk_cap=4)
    logits = jax.block_until_ready(logits)
    assert logits.shape == (batch, num_classes)
    assert jnp.allclose(logits, ref, atol=2e-2, rtol=2e-2), (
        "mismatch vs reference (even chunks):\n%s\nvs\n%s" % (logits, ref))

    # Ragged tail (chunk=5 over T=8): exercises the masked-step path.
    logits_r = lstm_classifier_forward(x, prepped, num_classes=num_classes,
                                       time_chunk_cap=5)
    logits_r = jax.block_until_ready(logits_r)
    assert jnp.allclose(logits_r, ref, atol=2e-2, rtol=2e-2), (
        "mismatch vs reference (ragged chunks):\n%s\nvs\n%s" % (logits_r, ref))

    print("KERNEL_OK")
</pallas_src>

<mosaic_0001>
module attributes {stable_mosaic.version = 11 : i64} {
  func.func @_lstm_classifier_kernel(%arg0: i32, %arg1: i32, %arg2: memref<4x8x128xbf16, #tpu.memory_space<vmem>>, %arg3: memref<128x512xbf16, #tpu.memory_space<vmem>>, %arg4: memref<1x128x512xbf16, #tpu.memory_space<vmem>>, %arg5: memref<2x128x512xbf16, #tpu.memory_space<vmem>>, %arg6: memref<2x1x512xf32, #tpu.memory_space<vmem>>, %arg7: memref<128x128xbf16, #tpu.memory_space<vmem>>, %arg8: memref<1x128xf32, #tpu.memory_space<vmem>>, %arg9: memref<8x128xf32, #tpu.memory_space<vmem>>, %arg10: memref<2x8x128xf32, #tpu.memory_space<vmem>>, %arg11: memref<2x8x128xf32, #tpu.memory_space<vmem>>, %arg12: memref<4x8x512xf32, #tpu.memory_space<vmem>>, %arg13: memref<4x8x128xbf16, #tpu.memory_space<vmem>>) attributes {dimension_semantics = [#tpu.dimension_semantics<parallel>, #tpu.dimension_semantics<arbitrary>], iteration_bounds = array<i64: 1, 2>, scalar_prefetch = 0 : i64, scratch_operands = 4 : i64, tpu.core_type = #tpu.core_type<tc>, window_params = [{transform_indices = @transform_0, window_bounds = array<i64: 4, 8, 128>}, {pipeline_mode = #tpu.pipeline_mode<synchronous>, transform_indices = @transform_1, window_bounds = array<i64: 128, 512>}, {pipeline_mode = #tpu.pipeline_mode<synchronous>, transform_indices = @transform_2, window_bounds = array<i64: 1, 128, 512>}, {pipeline_mode = #tpu.pipeline_mode<synchronous>, transform_indices = @transform_3, window_bounds = array<i64: 2, 128, 512>}, {pipeline_mode = #tpu.pipeline_mode<synchronous>, transform_indices = @transform_4, window_bounds = array<i64: 2, 1, 512>}, {pipeline_mode = #tpu.pipeline_mode<synchronous>, transform_indices = @transform_5, window_bounds = array<i64: 128, 128>}, {pipeline_mode = #tpu.pipeline_mode<synchronous>, transform_indices = @transform_6, window_bounds = array<i64: 1, 128>}, {transform_indices = @transform_7, window_bounds = array<i64: 8, 128>}]} {
    %c0_i32 = arith.constant 0 : i32
    %0 = arith.cmpi eq, %arg1, %c0_i32 : i32
    %1 = arith.extui %0 : i1 to i32
    %c0_i32_0 = arith.constant 0 : i32
    %2 = arith.cmpi ne, %1, %c0_i32_0 : i32
    scf.if %2 {
      %cst_101 = arith.constant 0.000000e+00 : f32
      %247 = vector.broadcast %cst_101 : f32 to vector<2x8x128xf32>
      %c0_102 = arith.constant 0 : index
      %c0_103 = arith.constant 0 : index
      %c0_104 = arith.constant 0 : index
      %248 = vector.load %arg10[%c0_102, %c0_103, %c0_104] : memref<2x8x128xf32, #tpu.memory_space<vmem>>, vector<2x8x128xf32>
      tpu.vector_store %arg10[%c0_102, %c0_103, %c0_104], %247 {strides = array<i32>} : memref<2x8x128xf32, #tpu.memory_space<vmem>>, vector<2x8x128xf32>,
      %cst_105 = arith.constant 0.000000e+00 : f32
      %249 = vector.broadcast %cst_105 : f32 to vector<2x8x128xf32>
      %c0_106 = arith.constant 0 : index
      %c0_107 = arith.constant 0 : index
      %c0_108 = arith.constant 0 : index
      %250 = vector.load %arg11[%c0_106, %c0_107, %c0_108] : memref<2x8x128xf32, #tpu.memory_space<vmem>>, vector<2x8x128xf32>
      tpu.vector_store %arg11[%c0_106, %c0_107, %c0_108], %249 {strides = array<i32>} : memref<2x8x128xf32, #tpu.memory_space<vmem>>, vector<2x8x128xf32>,
    } else {
    }
    %c0 = arith.constant 0 : index
    %c0_1 = arith.constant 0 : index
    %c0_2 = arith.constant 0 : index
    %3 = vector.load %arg2[%c0, %c0_1, %c0_2] : memref<4x8x128xbf16, #tpu.memory_space<vmem>>, vector<4x8x128xbf16>
    %4 = vector.shape_cast %3 : vector<4x8x128xbf16> to vector<32x128xbf16>
    %c0_3 = arith.constant 0 : index
    %c0_4 = arith.constant 0 : index
    %5 = vector.load %arg3[%c0_3, %c0_4] : memref<128x512xbf16, #tpu.memory_space<vmem>>, vector<128x512xbf16>
    %cst = arith.constant dense<0.000000e+00> : vector<32x512xf32>
    %6 = tpu.matmul %4, %5, %cst {dimension_numbers = #tpu.dot_dimension_numbers<[1], [0], [0], [1], [0, 0, 1, 1], [], []>} : vector<32x128xbf16>, vector<128x512xbf16>, vector<32x512xf32> -> vector<32x512xf32>
    %c0_5 = arith.constant 0 : index
    %c0_6 = arith.constant 0 : index
    %c0_7 = arith.constant 0 : index
    %7 = vector.load %arg6[%c0_5, %c0_6, %c0_7] : memref<2x1x512xf32, #tpu.memory_space<vmem>>, vector<1x1x512xf32>
    %8 = vector.shape_cast %7 : vector<1x1x512xf32> to vector<1x512xf32>
    %9 = vector.broadcast %8 : vector<1x512xf32> to vector<32x512xf32>
    %10 = arith.addf %6, %9 : vector<32x512xf32>
    %11 = vector.shape_cast %10 : vector<32x512xf32> to vector<4x8x512xf32>
    %c0_8 = arith.constant 0 : index
    %c0_9 = arith.constant 0 : index
    %c0_10 = arith.constant 0 : index
    %12 = vector.load %arg12[%c0_8, %c0_9, %c0_10] : memref<4x8x512xf32, #tpu.memory_space<vmem>>, vector<4x8x512xf32>
    tpu.vector_store %arg12[%c0_8, %c0_9, %c0_10], %11 {strides = array<i32>} : memref<4x8x512xf32, #tpu.memory_space<vmem>>, vector<4x8x512xf32>,
    %c0_11 = arith.constant 0 : index
    %c0_12 = arith.constant 0 : index
    %c0_13 = arith.constant 0 : index
    %13 = vector.load %arg5[%c0_11, %c0_12, %c0_13] : memref<2x128x512xbf16, #tpu.memory_space<vmem>>, vector<1x128x512xbf16>
    %14 = vector.shape_cast %13 : vector<1x128x512xbf16> to vector<128x512xbf16>
    %c0_14 = arith.constant 0 : index
    %c0_15 = arith.constant 0 : index
    %c0_16 = arith.constant 0 : index
    %15 = vector.load %arg10[%c0_14, %c0_15, %c0_16] : memref<2x8x128xf32, #tpu.memory_space<vmem>>, vector<1x8x128xf32>
    %16 = vector.shape_cast %15 : vector<1x8x128xf32> to vector<8x128xf32>
    %c0_17 = arith.constant 0 : index
    %c0_18 = arith.constant 0 : index
    %c0_19 = arith.constant 0 : index
    %17 = vector.load %arg11[%c0_17, %c0_18, %c0_19] : memref<2x8x128xf32, #tpu.memory_space<vmem>>, vector<1x8x128xf32>
    %18 = vector.shape_cast %17 : vector<1x8x128xf32> to vector<8x128xf32>
    %c0_i32_20 = arith.constant 0 : i32
    %19 = arith.index_cast %c0_i32_20 : i32 to index
    %c0_21 = arith.constant 0 : index
    %c0_22 = arith.constant 0 : index
    %20 = vector.load %arg12[%19, %c0_21, %c0_22] : memref<4x8x512xf32, #tpu.memory_space<vmem>>, vector<1x8x512xf32>
    %21 = vector.shape_cast %20 : vector<1x8x512xf32> to vector<8x512xf32>
    %22 = arith.truncf %16 : vector<8x128xf32> to vector<8x128xbf16>
    %cst_23 = arith.constant dense<0.000000e+00> : vector<8x512xf32>
    %23 = tpu.matmul %22, %14, %cst_23 {dimension_numbers = #tpu.dot_dimension_numbers<[1], [0], [0], [1], [0, 0, 1, 1], [], []>} : vector<8x128xbf16>, vector<128x512xbf16>, vector<8x512xf32> -> vector<8x512xf32>
    %24 = arith.addf %21, %23 : vector<8x512xf32>
    %25 = vector.extract_strided_slice %24 {offsets = [0, 0], sizes = [8, 384], strides = [1, 1]} : vector<8x512xf32> to vector<8x384xf32>
    %26 = arith.negf %25 : vector<8x384xf32>
    %27 = math.exp %26 : vector<8x384xf32>
    %cst_24 = arith.constant 1.000000e+00 : f32
    %28 = vector.broadcast %cst_24 : f32 to vector<8x384xf32>
    %29 = arith.addf %28, %27 : vector<8x384xf32>
    %30 = arith.divf %28, %29 : vector<8x384xf32>
    %31 = vector.extract_strided_slice %30 {offsets = [0, 0], sizes = [8, 128], strides = [1, 1]} : vector<8x384xf32> to vector<8x128xf32>
    %32 = vector.extract_strided_slice %30 {offsets = [0, 128], sizes = [8, 128], strides = [1, 1]} : vector<8x384xf32> to vector<8x128xf32>
    %33 = vector.extract_strided_slice %30 {offsets = [0, 256], sizes = [8, 128], strides = [1, 1]} : vector<8x384xf32> to vector<8x128xf32>
    %34 = vector.extract_strided_slice %24 {offsets = [0, 384], sizes = [8, 128], strides = [1, 1]} : vector<8x512xf32> to vector<8x128xf32>
    %35 = math.tanh %34 : vector<8x128xf32>
    %36 = arith.mulf %32, %18 : vector<8x128xf32>
    %37 = arith.mulf %31, %35 : vector<8x128xf32>
    %38 = arith.addf %36, %37 : vector<8x128xf32>
    %39 = math.tanh %38 : vector<8x128xf32>
    %40 = arith.mulf %33, %39 : vector<8x128xf32>
    %41 = arith.truncf %40 : vector<8x128xf32> to vector<8x128xbf16>
    %42 = arith.index_cast %c0_i32_20 : i32 to index
    %c0_25 = arith.constant 0 : index
    %c0_26 = arith.constant 0 : index
    %43 = vector.load %arg13[%42, %c0_25, %c0_26] : memref<4x8x128xbf16, #tpu.memory_space<vmem>>, vector<1x8x128xbf16>
    %44 = vector.shape_cast %43 : vector<1x8x128xbf16> to vector<8x128xbf16>
    %45 = vector.shape_cast %41 : vector<8x128xbf16> to vector<1x8x128xbf16>
    tpu.vector_store %arg13[%42, %c0_25, %c0_26], %45 {strides = array<i32>} : memref<4x8x128xbf16, #tpu.memory_space<vmem>>, vector<1x8x128xbf16>,
    %c1_i32 = arith.constant 1 : i32
    %46 = arith.index_cast %c1_i32 : i32 to index
    %c0_27 = arith.constant 0 : index
    %c0_28 = arith.constant 0 : index
    %47 = vector.load %arg12[%46, %c0_27, %c0_28] : memref<4x8x512xf32, #tpu.memory_space<vmem>>, vector<1x8x512xf32>
    %48 = vector.shape_cast %47 : vector<1x8x512xf32> to vector<8x512xf32>
    %49 = arith.truncf %40 : vector<8x128xf32> to vector<8x128xbf16>
    %cst_29 = arith.constant dense<0.000000e+00> : vector<8x512xf32>
    %50 = tpu.matmul %49, %14, %cst_29 {dimension_numbers = #tpu.dot_dimension_numbers<[1], [0], [0], [1], [0, 0, 1, 1], [], []>} : vector<8x128xbf16>, vector<128x512xbf16>, vector<8x512xf32> -> vector<8x512xf32>
    %51 = arith.addf %48, %50 : vector<8x512xf32>
    %52 = vector.extract_strided_slice %51 {offsets = [0, 0], sizes = [8, 384], strides = [1, 1]} : vector<8x512xf32> to vector<8x384xf32>
    %53 = arith.negf %52 : vector<8x384xf32>
    %54 = math.exp %53 : vector<8x384xf32>
    %cst_30 = arith.constant 1.000000e+00 : f32
    %55 = vector.broadcast %cst_30 : f32 to vector<8x384xf32>
    %56 = arith.addf %55, %54 : vector<8x384xf32>
    %57 = arith.divf %55, %56 : vector<8x384xf32>
    %58 = vector.extract_strided_slice %57 {offsets = [0, 0], sizes = [8, 128], strides = [1, 1]} : vector<8x384xf32> to vector<8x128xf32>
    %59 = vector.extract_strided_slice %57 {offsets = [0, 128], sizes = [8, 128], strides = [1, 1]} : vector<8x384xf32> to vector<8x128xf32>
    %60 = vector.extract_strided_slice %57 {offsets = [0, 256], sizes = [8, 128], strides = [1, 1]} : vector<8x384xf32> to vector<8x128xf32>
    %61 = vector.extract_strided_slice %51 {offsets = [0, 384], sizes = [8, 128], strides = [1, 1]} : vector<8x512xf32> to vector<8x128xf32>
    %62 = math.tanh %61 : vector<8x128xf32>
    %63 = arith.mulf %59, %38 : vector<8x128xf32>
    %64 = arith.mulf %58, %62 : vector<8x128xf32>
    %65 = arith.addf %63, %64 : vector<8x128xf32>
    %66 = math.tanh %65 : vector<8x128xf32>
    %67 = arith.mulf %60, %66 : vector<8x128xf32>
    %68 = arith.truncf %67 : vector<8x128xf32> to vector<8x128xbf16>
    %69 = arith.index_cast %c1_i32 : i32 to index
    %c0_31 = arith.constant 0 : index
    %c0_32 = arith.constant 0 : index
    %70 = vector.load %arg13[%69, %c0_31, %c0_32] : memref<4x8x128xbf16, #tpu.memory_space<vmem>>, vector<1x8x128xbf16>
    %71 = vector.shape_cast %70 : vector<1x8x128xbf16> to vector<8x128xbf16>
    %72 = vector.shape_cast %68 : vector<8x128xbf16> to vector<1x8x128xbf16>
    tpu.vector_store %arg13[%69, %c0_31, %c0_32], %72 {strides = array<i32>} : memref<4x8x128xbf16, #tpu.memory_space<vmem>>, vector<1x8x128xbf16>,
    %c2_i32 = arith.constant 2 : i32
    %73 = arith.index_cast %c2_i32 : i32 to index
    %c0_33 = arith.constant 0 : index
    %c0_34 = arith.constant 0 : index
    %74 = vector.load %arg12[%73, %c0_33, %c0_34] : memref<4x8x512xf32, #tpu.memory_space<vmem>>, vector<1x8x512xf32>
    %75 = vector.shape_cast %74 : vector<1x8x512xf32> to vector<8x512xf32>
    %76 = arith.truncf %67 : vector<8x128xf32> to vector<8x128xbf16>
    %cst_35 = arith.constant dense<0.000000e+00> : vector<8x512xf32>
    %77 = tpu.matmul %76, %14, %cst_35 {dimension_numbers = #tpu.dot_dimension_numbers<[1], [0], [0], [1], [0, 0, 1, 1], [], []>} : vector<8x128xbf16>, vector<128x512xbf16>, vector<8x512xf32> -> vector<8x512xf32>
    %78 = arith.addf %75, %77 : vector<8x512xf32>
    %79 = vector.extract_strided_slice %78 {offsets = [0, 0], sizes = [8, 384], strides = [1, 1]} : vector<8x512xf32> to vector<8x384xf32>
    %80 = arith.negf %79 : vector<8x384xf32>
    %81 = math.exp %80 : vector<8x384xf32>
    %cst_36 = arith.constant 1.000000e+00 : f32
    %82 = vector.broadcast %cst_36 : f32 to vector<8x384xf32>
    %83 = arith.addf %82, %81 : vector<8x384xf32>
    %84 = arith.divf %82, %83 : vector<8x384xf32>
    %85 = vector.extract_strided_slice %84 {offsets = [0, 0], sizes = [8, 128], strides = [1, 1]} : vector<8x384xf32> to vector<8x128xf32>
    %86 = vector.extract_strided_slice %84 {offsets = [0, 128], sizes = [8, 128], strides = [1, 1]} : vector<8x384xf32> to vector<8x128xf32>
    %87 = vector.extract_strided_slice %84 {offsets = [0, 256], sizes = [8, 128], strides = [1, 1]} : vector<8x384xf32> to vector<8x128xf32>
    %88 = vector.extract_strided_slice %78 {offsets = [0, 384], sizes = [8, 128], strides = [1, 1]} : vector<8x512xf32> to vector<8x128xf32>
    %89 = math.tanh %88 : vector<8x128xf32>
    %90 = arith.mulf %86, %65 : vector<8x128xf32>
    %91 = arith.mulf %85, %89 : vector<8x128xf32>
    %92 = arith.addf %90, %91 : vector<8x128xf32>
    %93 = math.tanh %92 : vector<8x128xf32>
    %94 = arith.mulf %87, %93 : vector<8x128xf32>
    %95 = arith.truncf %94 : vector<8x128xf32> to vector<8x128xbf16>
    %96 = arith.index_cast %c2_i32 : i32 to index
    %c0_37 = arith.constant 0 : index
    %c0_38 = arith.constant 0 : index
    %97 = vector.load %arg13[%96, %c0_37, %c0_38] : memref<4x8x128xbf16, #tpu.memory_space<vmem>>, vector<1x8x128xbf16>
    %98 = vector.shape_cast %97 : vector<1x8x128xbf16> to vector<8x128xbf16>
    %99 = vector.shape_cast %95 : vector<8x128xbf16> to vector<1x8x128xbf16>
    tpu.vector_store %arg13[%96, %c0_37, %c0_38], %99 {strides = array<i32>} : memref<4x8x128xbf16, #tpu.memory_space<vmem>>, vector<1x8x128xbf16>,
    %c3_i32 = arith.constant 3 : i32
    %100 = arith.index_cast %c3_i32 : i32 to index
    %c0_39 = arith.constant 0 : index
    %c0_40 = arith.constant 0 : index
    %101 = vector.load %arg12[%100, %c0_39, %c0_40] : memref<4x8x512xf32, #tpu.memory_space<vmem>>, vector<1x8x512xf32>
    %102 = vector.shape_cast %101 : vector<1x8x512xf32> to vector<8x512xf32>
    %103 = arith.truncf %94 : vector<8x128xf32> to vector<8x128xbf16>
    %cst_41 = arith.constant dense<0.000000e+00> : vector<8x512xf32>
    %104 = tpu.matmul %103, %14, %cst_41 {dimension_numbers = #tpu.dot_dimension_numbers<[1], [0], [0], [1], [0, 0, 1, 1], [], []>} : vector<8x128xbf16>, vector<128x512xbf16>, vector<8x512xf32> -> vector<8x512xf32>
    %105 = arith.addf %102, %104 : vector<8x512xf32>
    %106 = vector.extract_strided_slice %105 {offsets = [0, 0], sizes = [8, 384], strides = [1, 1]} : vector<8x512xf32> to vector<8x384xf32>
    %107 = arith.negf %106 : vector<8x384xf32>
    %108 = math.exp %107 : vector<8x384xf32>
    %cst_42 = arith.constant 1.000000e+00 : f32
    %109 = vector.broadcast %cst_42 : f32 to vector<8x384xf32>
    %110 = arith.addf %109, %108 : vector<8x384xf32>
    %111 = arith.divf %109, %110 : vector<8x384xf32>
    %112 = vector.extract_strided_slice %111 {offsets = [0, 0], sizes = [8, 128], strides = [1, 1]} : vector<8x384xf32> to vector<8x128xf32>
    %113 = vector.extract_strided_slice %111 {offsets = [0, 128], sizes = [8, 128], strides = [1, 1]} : vector<8x384xf32> to vector<8x128xf32>
    %114 = vector.extract_strided_slice %111 {offsets = [0, 256], sizes = [8, 128], strides = [1, 1]} : vector<8x384xf32> to vector<8x128xf32>
    %115 = vector.extract_strided_slice %105 {offsets = [0, 384], sizes = [8, 128], strides = [1, 1]} : vector<8x512xf32> to vector<8x128xf32>
    %116 = math.tanh %115 : vector<8x128xf32>
    %117 = arith.mulf %113, %92 : vector<8x128xf32>
    %118 = arith.mulf %112, %116 : vector<8x128xf32>
    %119 = arith.addf %117, %118 : vector<8x128xf32>
    %120 = math.tanh %119 : vector<8x128xf32>
    %121 = arith.mulf %114, %120 : vector<8x128xf32>
    %122 = arith.truncf %121 : vector<8x128xf32> to vector<8x128xbf16>
    %123 = arith.index_cast %c3_i32 : i32 to index
    %c0_43 = arith.constant 0 : index
    %c0_44 = arith.constant 0 : index
    %124 = vector.load %arg13[%123, %c0_43, %c0_44] : memref<4x8x128xbf16, #tpu.memory_space<vmem>>, vector<1x8x128xbf16>
    %125 = vector.shape_cast %124 : vector<1x8x128xbf16> to vector<8x128xbf16>
    %126 = vector.shape_cast %122 : vector<8x128xbf16> to vector<1x8x128xbf16>
    tpu.vector_store %arg13[%123, %c0_43, %c0_44], %126 {strides = array<i32>} : memref<4x8x128xbf16, #tpu.memory_space<vmem>>, vector<1x8x128xbf16>,
    %c4_i32 = arith.constant 4 : i32
    %c0_45 = arith.constant 0 : index
    %c0_46 = arith.constant 0 : index
    %c0_47 = arith.constant 0 : index
    %127 = vector.load %arg10[%c0_45, %c0_46, %c0_47] : memref<2x8x128xf32, #tpu.memory_space<vmem>>, vector<1x8x128xf32>
    %128 = vector.shape_cast %127 : vector<1x8x128xf32> to vector<8x128xf32>
    %129 = vector.shape_cast %121 : vector<8x128xf32> to vector<1x8x128xf32>
    tpu.vector_store %arg10[%c0_45, %c0_46, %c0_47], %129 {strides = array<i32>} : memref<2x8x128xf32, #tpu.memory_space<vmem>>, vector<1x8x128xf32>,
    %c0_48 = arith.constant 0 : index
    %c0_49 = arith.constant 0 : index
    %c0_50 = arith.constant 0 : index
    %130 = vector.load %arg11[%c0_48, %c0_49, %c0_50] : memref<2x8x128xf32, #tpu.memory_space<vmem>>, vector<1x8x128xf32>
    %131 = vector.shape_cast %130 : vector<1x8x128xf32> to vector<8x128xf32>
    %132 = vector.shape_cast %119 : vector<8x128xf32> to vector<1x8x128xf32>
    tpu.vector_store %arg11[%c0_48, %c0_49, %c0_50], %132 {strides = array<i32>} : memref<2x8x128xf32, #tpu.memory_space<vmem>>, vector<1x8x128xf32>,
    %c0_51 = arith.constant 0 : index
    %c0_52 = arith.constant 0 : index
    %c0_53 = arith.constant 0 : index
    %133 = vector.load %arg13[%c0_51, %c0_52, %c0_53] : memref<4x8x128xbf16, #tpu.memory_space<vmem>>, vector<4x8x128xbf16>
    %134 = vector.shape_cast %133 : vector<4x8x128xbf16> to vector<32x128xbf16>
    %c0_54 = arith.constant 0 : index
    %c0_55 = arith.constant 0 : index
    %c0_56 = arith.constant 0 : index
    %135 = vector.load %arg4[%c0_54, %c0_55, %c0_56] : memref<1x128x512xbf16, #tpu.memory_space<vmem>>, vector<1x128x512xbf16>
    %136 = vector.shape_cast %135 : vector<1x128x512xbf16> to vector<128x512xbf16>
    %cst_57 = arith.constant dense<0.000000e+00> : vector<32x512xf32>
    %137 = tpu.matmul %134, %136, %cst_57 {dimension_numbers = #tpu.dot_dimension_numbers<[1], [0], [0], [1], [0, 0, 1, 1], [], []>} : vector<32x128xbf16>, vector<128x512xbf16>, vector<32x512xf32> -> vector<32x512xf32>
    %c1 = arith.constant 1 : index
    %c0_58 = arith.constant 0 : index
    %c0_59 = arith.constant 0 : index
    %138 = vector.load %arg6[%c1, %c0_58, %c0_59] : memref<2x1x512xf32, #tpu.memory_space<vmem>>, vector<1x1x512xf32>
    %139 = vector.shape_cast %138 : vector<1x1x512xf32> to vector<1x512xf32>
    %140 = vector.broadcast %139 : vector<1x512xf32> to vector<32x512xf32>
    %141 = arith.addf %137, %140 : vector<32x512xf32>
    %142 = vector.shape_cast %141 : vector<32x512xf32> to vector<4x8x512xf32>
    %c0_60 = arith.constant 0 : index
    %c0_61 = arith.constant 0 : index
    %c0_62 = arith.constant 0 : index
    %143 = vector.load %arg12[%c0_60, %c0_61, %c0_62] : memref<4x8x512xf32, #tpu.memory_space<vmem>>, vector<4x8x512xf32>
    tpu.vector_store %arg12[%c0_60, %c0_61, %c0_62], %142 {strides = array<i32>} : memref<4x8x512xf32, #tpu.memory_space<vmem>>, vector<4x8x512xf32>,
    %c1_63 = arith.constant 1 : index
    %c0_64 = arith.constant 0 : index
    %c0_65 = arith.constant 0 : index
    %144 = vector.load %arg5[%c1_63, %c0_64, %c0_65] : memref<2x128x512xbf16, #tpu.memory_space<vmem>>, vector<1x128x512xbf16>
    %145 = vector.shape_cast %144 : vector<1x128x512xbf16> to vector<128x512xbf16>
    %c1_66 = arith.constant 1 : index
    %c0_67 = arith.constant 0 : index
    %c0_68 = arith.constant 0 : index
    %146 = vector.load %arg10[%c1_66, %c0_67, %c0_68] : memref<2x8x128xf32, #tpu.memory_space<vmem>>, vector<1x8x128xf32>
    %147 = vector.shape_cast %146 : vector<1x8x128xf32> to vector<8x128xf32>
    %c1_69 = arith.constant 1 : index
    %c0_70 = arith.constant 0 : index
    %c0_71 = arith.constant 0 : index
    %148 = vector.load %arg11[%c1_69, %c0_70, %c0_71] : memref<2x8x128xf32, #tpu.memory_space<vmem>>, vector<1x8x128xf32>
    %149 = vector.shape_cast %148 : vector<1x8x128xf32> to vector<8x128xf32>
    %c0_i32_72 = arith.constant 0 : i32
    %150 = arith.index_cast %c0_i32_72 : i32 to index
    %c0_73 = arith.constant 0 : index
    %c0_74 = arith.constant 0 : index
    %151 = vector.load %arg12[%150, %c0_73, %c0_74] : memref<4x8x512xf32, #tpu.memory_space<vmem>>, vector<1x8x512xf32>
    %152 = vector.shape_cast %151 : vector<1x8x512xf32> to vector<8x512xf32>
    %153 = arith.truncf %147 : vector<8x128xf32> to vector<8x128xbf16>
    %cst_75 = arith.constant dense<0.000000e+00> : vector<8x512xf32>
    %154 = tpu.matmul %153, %145, %cst_75 {dimension_numbers = #tpu.dot_dimension_numbers<[1], [0], [0], [1], [0, 0, 1, 1], [], []>} : vector<8x128xbf16>, vector<128x512xbf16>, vector<8x512xf32> -> vector<8x512xf32>
    %155 = arith.addf %152, %154 : vector<8x512xf32>
    %156 = vector.extract_strided_slice %155 {offsets = [0, 0], sizes = [8, 384], strides = [1, 1]} : vector<8x512xf32> to vector<8x384xf32>
    %157 = arith.negf %156 : vector<8x384xf32>
    %158 = math.exp %157 : vector<8x384xf32>
    %cst_76 = arith.constant 1.000000e+00 : f32
    %159 = vector.broadcast %cst_76 : f32 to vector<8x384xf32>
    %160 = arith.addf %159, %158 : vector<8x384xf32>
    %161 = arith.divf %159, %160 : vector<8x384xf32>
    %162 = vector.extract_strided_slice %161 {offsets = [0, 0], sizes = [8, 128], strides = [1, 1]} : vector<8x384xf32> to vector<8x128xf32>
    %163 = vector.extract_strided_slice %161 {offsets = [0, 128], sizes = [8, 128], strides = [1, 1]} : vector<8x384xf32> to vector<8x128xf32>
    %164 = vector.extract_strided_slice %161 {offsets = [0, 256], sizes = [8, 128], strides = [1, 1]} : vector<8x384xf32> to vector<8x128xf32>
    %165 = vector.extract_strided_slice %155 {offsets = [0, 384], sizes = [8, 128], strides = [1, 1]} : vector<8x512xf32> to vector<8x128xf32>
    %166 = math.tanh %165 : vector<8x128xf32>
    %167 = arith.mulf %163, %149 : vector<8x128xf32>
    %168 = arith.mulf %162, %166 : vector<8x128xf32>
    %169 = arith.addf %167, %168 : vector<8x128xf32>
    %170 = math.tanh %169 : vector<8x128xf32>
    %171 = arith.mulf %164, %170 : vector<8x128xf32>
    %c1_i32_77 = arith.constant 1 : i32
    %172 = arith.index_cast %c1_i32_77 : i32 to index
    %c0_78 = arith.constant 0 : index
    %c0_79 = arith.constant 0 : index
    %173 = vector.load %arg12[%172, %c0_78, %c0_79] : memref<4x8x512xf32, #tpu.memory_space<vmem>>, vector<1x8x512xf32>
    %174 = vector.shape_cast %173 : vector<1x8x512xf32> to vector<8x512xf32>
    %175 = arith.truncf %171 : vector<8x128xf32> to vector<8x128xbf16>
    %cst_80 = arith.constant dense<0.000000e+00> : vector<8x512xf32>
    %176 = tpu.matmul %175, %145, %cst_80 {dimension_numbers = #tpu.dot_dimension_numbers<[1], [0], [0], [1], [0, 0, 1, 1], [], []>} : vector<8x128xbf16>, vector<128x512xbf16>, vector<8x512xf32> -> vector<8x512xf32>
    %177 = arith.addf %174, %176 : vector<8x512xf32>
    %178 = vector.extract_strided_slice %177 {offsets = [0, 0], sizes = [8, 384], strides = [1, 1]} : vector<8x512xf32> to vector<8x384xf32>
    %179 = arith.negf %178 : vector<8x384xf32>
    %180 = math.exp %179 : vector<8x384xf32>
    %cst_81 = arith.constant 1.000000e+00 : f32
    %181 = vector.broadcast %cst_81 : f32 to vector<8x384xf32>
    %182 = arith.addf %181, %180 : vector<8x384xf32>
    %183 = arith.divf %181, %182 : vector<8x384xf32>
    %184 = vector.extract_strided_slice %183 {offsets = [0, 0], sizes = [8, 128], strides = [1, 1]} : vector<8x384xf32> to vector<8x128xf32>
    %185 = vector.extract_strided_slice %183 {offsets = [0, 128], sizes = [8, 128], strides = [1, 1]} : vector<8x384xf32> to vector<8x128xf32>
    %186 = vector.extract_strided_slice %183 {offsets = [0, 256], sizes = [8, 128], strides = [1, 1]} : vector<8x384xf32> to vector<8x128xf32>
    %187 = vector.extract_strided_slice %177 {offsets = [0, 384], sizes = [8, 128], strides = [1, 1]} : vector<8x512xf32> to vector<8x128xf32>
    %188 = math.tanh %187 : vector<8x128xf32>
    %189 = arith.mulf %185, %169 : vector<8x128xf32>
    %190 = arith.mulf %184, %188 : vector<8x128xf32>
    %191 = arith.addf %189, %190 : vector<8x128xf32>
    %192 = math.tanh %191 : vector<8x128xf32>
    %193 = arith.mulf %186, %192 : vector<8x128xf32>
    %c2_i32_82 = arith.constant 2 : i32
    %194 = arith.index_cast %c2_i32_82 : i32 to index
    %c0_83 = arith.constant 0 : index
    %c0_84 = arith.constant 0 : index
    %195 = vector.load %arg12[%194, %c0_83, %c0_84] : memref<4x8x512xf32, #tpu.memory_space<vmem>>, vector<1x8x512xf32>
    %196 = vector.shape_cast %195 : vector<1x8x512xf32> to vector<8x512xf32>
    %197 = arith.truncf %193 : vector<8x128xf32> to vector<8x128xbf16>
    %cst_85 = arith.constant dense<0.000000e+00> : vector<8x512xf32>
    %198 = tpu.matmul %197, %145, %cst_85 {dimension_numbers = #tpu.dot_dimension_numbers<[1], [0], [0], [1], [0, 0, 1, 1], [], []>} : vector<8x128xbf16>, vector<128x512xbf16>, vector<8x512xf32> -> vector<8x512xf32>
    %199 = arith.addf %196, %198 : vector<8x512xf32>
    %200 = vector.extract_strided_slice %199 {offsets = [0, 0], sizes = [8, 384], strides = [1, 1]} : vector<8x512xf32> to vector<8x384xf32>
    %201 = arith.negf %200 : vector<8x384xf32>
    %202 = math.exp %201 : vector<8x384xf32>
    %cst_86 = arith.constant 1.000000e+00 : f32
    %203 = vector.broadcast %cst_86 : f32 to vector<8x384xf32>
    %204 = arith.addf %203, %202 : vector<8x384xf32>
    %205 = arith.divf %203, %204 : vector<8x384xf32>
    %206 = vector.extract_strided_slice %205 {offsets = [0, 0], sizes = [8, 128], strides = [1, 1]} : vector<8x384xf32> to vector<8x128xf32>
    %207 = vector.extract_strided_slice %205 {offsets = [0, 128], sizes = [8, 128], strides = [1, 1]} : vector<8x384xf32> to vector<8x128xf32>
    %208 = vector.extract_strided_slice %205 {offsets = [0, 256], sizes = [8, 128], strides = [1, 1]} : vector<8x384xf32> to vector<8x128xf32>
    %209 = vector.extract_strided_slice %199 {offsets = [0, 384], sizes = [8, 128], strides = [1, 1]} : vector<8x512xf32> to vector<8x128xf32>
    %210 = math.tanh %209 : vector<8x128xf32>
    %211 = arith.mulf %207, %191 : vector<8x128xf32>
    %212 = arith.mulf %206, %210 : vector<8x128xf32>
    %213 = arith.addf %211, %212 : vector<8x128xf32>
    %214 = math.tanh %213 : vector<8x128xf32>
    %215 = arith.mulf %208, %214 : vector<8x128xf32>
    %c3_i32_87 = arith.constant 3 : i32
    %216 = arith.index_cast %c3_i32_87 : i32 to index
    %c0_88 = arith.constant 0 : index
    %c0_89 = arith.constant 0 : index
    %217 = vector.load %arg12[%216, %c0_88, %c0_89] : memref<4x8x512xf32, #tpu.memory_space<vmem>>, vector<1x8x512xf32>
    %218 = vector.shape_cast %217 : vector<1x8x512xf32> to vector<8x512xf32>
    %219 = arith.truncf %215 : vector<8x128xf32> to vector<8x128xbf16>
    %cst_90 = arith.constant dense<0.000000e+00> : vector<8x512xf32>
    %220 = tpu.matmul %219, %145, %cst_90 {dimension_numbers = #tpu.dot_dimension_numbers<[1], [0], [0], [1], [0, 0, 1, 1], [], []>} : vector<8x128xbf16>, vector<128x512xbf16>, vector<8x512xf32> -> vector<8x512xf32>
    %221 = arith.addf %218, %220 : vector<8x512xf32>
    %222 = vector.extract_strided_slice %221 {offsets = [0, 0], sizes = [8, 384], strides = [1, 1]} : vector<8x512xf32> to vector<8x384xf32>
    %223 = arith.negf %222 : vector<8x384xf32>
    %224 = math.exp %223 : vector<8x384xf32>
    %cst_91 = arith.constant 1.000000e+00 : f32
    %225 = vector.broadcast %cst_91 : f32 to vector<8x384xf32>
    %226 = arith.addf %225, %224 : vector<8x384xf32>
    %227 = arith.divf %225, %226 : vector<8x384xf32>
    %228 = vector.extract_strided_slice %227 {offsets = [0, 0], sizes = [8, 128], strides = [1, 1]} : vector<8x384xf32> to vector<8x128xf32>
    %229 = vector.extract_strided_slice %227 {offsets = [0, 128], sizes = [8, 128], strides = [1, 1]} : vector<8x384xf32> to vector<8x128xf32>
    %230 = vector.extract_strided_slice %227 {offsets = [0, 256], sizes = [8, 128], strides = [1, 1]} : vector<8x384xf32> to vector<8x128xf32>
    %231 = vector.extract_strided_slice %221 {offsets = [0, 384], sizes = [8, 128], strides = [1, 1]} : vector<8x512xf32> to vector<8x128xf32>
    %232 = math.tanh %231 : vector<8x128xf32>
    %233 = arith.mulf %229, %213 : vector<8x128xf32>
    %234 = arith.mulf %228, %232 : vector<8x128xf32>
    %235 = arith.addf %233, %234 : vector<8x128xf32>
    %236 = math.tanh %235 : vector<8x128xf32>
    %237 = arith.mulf %230, %236 : vector<8x128xf32>
    %c4_i32_92 = arith.constant 4 : i32
    %c1_93 = arith.constant 1 : index
    %c0_94 = arith.constant 0 : index
    %c0_95 = arith.constant 0 : index
    %238 = vector.load %arg10[%c1_93, %c0_94, %c0_95] : memref<2x8x128xf32, #tpu.memory_space<vmem>>, vector<1x8x128xf32>
    %239 = vector.shape_cast %238 : vector<1x8x128xf32> to vector<8x128xf32>
    %240 = vector.shape_cast %237 : vector<8x128xf32> to vector<1x8x128xf32>
    tpu.vector_store %arg10[%c1_93, %c0_94, %c0_95], %240 {strides = array<i32>} : memref<2x8x128xf32, #tpu.memory_space<vmem>>, vector<1x8x128xf32>,
    %c1_96 = arith.constant 1 : index
    %c0_97 = arith.constant 0 : index
    %c0_98 = arith.constant 0 : index
    %241 = vector.load %arg11[%c1_96, %c0_97, %c0_98] : memref<2x8x128xf32, #tpu.memory_space<vmem>>, vector<1x8x128xf32>
    %242 = vector.shape_cast %241 : vector<1x8x128xf32> to vector<8x128xf32>
    %243 = vector.shape_cast %235 : vector<8x128xf32> to vector<1x8x128xf32>
    tpu.vector_store %arg11[%c1_96, %c0_97, %c0_98], %243 {strides = array<i32>} : memref<2x8x128xf32, #tpu.memory_space<vmem>>, vector<1x8x128xf32>,
    %c1_i32_99 = arith.constant 1 : i32
    %244 = arith.cmpi eq, %arg1, %c1_i32_99 : i32
    %245 = arith.extui %244 : i1 to i32
    %c0_i32_100 = arith.constant 0 : i32
    %246 = arith.cmpi ne, %245, %c0_i32_100 : i32
    scf.if %246 {
      %247 = arith.truncf %237 : vector<8x128xf32> to vector<8x128xbf16>
      %c0_101 = arith.constant 0 : index
      %c0_102 = arith.constant 0 : index
      %248 = vector.load %arg7[%c0_101, %c0_102] : memref<128x128xbf16, #tpu.memory_space<vmem>>, vector<128x128xbf16>
      %cst_103 = arith.constant dense<0.000000e+00> : vector<8x128xf32>
      %249 = tpu.matmul %247, %248, %cst_103 {dimension_numbers = #tpu.dot_dimension_numbers<[1], [0], [0], [1], [0, 0, 1, 1], [], []>} : vector<8x128xbf16>, vector<128x128xbf16>, vector<8x128xf32> -> vector<8x128xf32>
      %c0_104 = arith.constant 0 : index
      %c0_105 = arith.constant 0 : index
      %250 = vector.load %arg8[%c0_104, %c0_105] : memref<1x128xf32, #tpu.memory_space<vmem>>, vector<1x128xf32>
      %251 = vector.broadcast %250 : vector<1x128xf32> to vector<8x128xf32>
      %252 = arith.addf %249, %251 : vector<8x128xf32>
      %c0_106 = arith.constant 0 : index
      %c0_107 = arith.constant 0 : index
      %253 = vector.load %arg9[%c0_106, %c0_107] : memref<8x128xf32, #tpu.memory_space<vmem>>, vector<8x128xf32>
      tpu.vector_store %arg9[%c0_106, %c0_107], %252 {strides = array<i32>} : memref<8x128xf32, #tpu.memory_space<vmem>>, vector<8x128xf32>,
    } else {
    }
    return
  }
  func.func @transform_0(%arg0: i32, %arg1: i32) -> (i32, i32, i32) {
    %c0_i32 = arith.constant 0 : i32
    %c0_i32_0 = arith.constant 0 : i32
    return %arg1, %arg0, %c0_i32 : i32, i32, i32
  }
  func.func @transform_1(%arg0: i32, %arg1: i32) -> (i32, i32) {
    %c0_i32 = arith.constant 0 : i32
    %c0_i32_0 = arith.constant 0 : i32
    %c0_i32_1 = arith.constant 0 : i32
    return %c0_i32, %c0_i32_0 : i32, i32
  }
  func.func @transform_2(%arg0: i32, %arg1: i32) -> (i32, i32, i32) {
    %c0_i32 = arith.constant 0 : i32
    %c0_i32_0 = arith.constant 0 : i32
    %c0_i32_1 = arith.constant 0 : i32
    %c0_i32_2 = arith.constant 0 : i32
    return %c0_i32, %c0_i32_0, %c0_i32_1 : i32, i32, i32
  }
  func.func @transform_3(%arg0: i32, %arg1: i32) -> (i32, i32, i32) {
    %c0_i32 = arith.constant 0 : i32
    %c0_i32_0 = arith.constant 0 : i32
    %c0_i32_1 = arith.constant 0 : i32
    %c0_i32_2 = arith.constant 0 : i32
    return %c0_i32, %c0_i32_0, %c0_i32_1 : i32, i32, i32
  }
  func.func @transform_4(%arg0: i32, %arg1: i32) -> (i32, i32, i32) {
    %c0_i32 = arith.constant 0 : i32
    %c0_i32_0 = arith.constant 0 : i32
    %c0_i32_1 = arith.constant 0 : i32
    %c0_i32_2 = arith.constant 0 : i32
    return %c0_i32, %c0_i32_0, %c0_i32_1 : i32, i32, i32
  }
  func.func @transform_5(%arg0: i32, %arg1: i32) -> (i32, i32) {
    %c0_i32 = arith.constant 0 : i32
    %c0_i32_0 = arith.constant 0 : i32
    %c0_i32_1 = arith.constant 0 : i32
    return %c0_i32, %c0_i32_0 : i32, i32
  }
  func.func @transform_6(%arg0: i32, %arg1: i32) -> (i32, i32) {
    %c0_i32 = arith.constant 0 : i32
    %c0_i32_0 = arith.constant 0 : i32
    %c0_i32_1 = arith.constant 0 : i32
    return %c0_i32, %c0_i32_0 : i32, i32
  }
  func.func @transform_7(%arg0: i32, %arg1: i32) -> (i32, i32) {
    %c0_i32 = arith.constant 0 : i32
    %c0_i32_0 = arith.constant 0 : i32
    return %arg0, %c0_i32 : i32, i32
  }
}

</mosaic_0001>

<bundles_post_ra>
// kernel: lstm_classifier_forward.1
= control target key start
LH: loop header
LB: loop body
LE: loop exit
PB: predicated region body
PF: predicated region fallthrough
CT: control target
= control target key end

     0   :  { %12 = vsyncpa [#allocation7], 0  ;;  %s4108_s0 = inlined_call_operand.vmem [shape: bf16[8,8,128], index: 0, kind: input, shape index: {}]   ;;  %s4109_s1 = inlined_call_operand.hbm [shape: bf16[128,512], index: 1, kind: input, shape index: {}]   ;;  %s4110_s2 = inlined_call_operand.hbm [shape: bf16[1,128,512], index: 2, kind: input, shape index: {}]   ;;  %s4111_s3 = inlined_call_operand.hbm [shape: bf16[2,128,512], index: 3, kind: input, shape index: {}]   ;;  %s4112_s4 = inlined_call_operand.vmem [shape: f32[2,1,512], index: 4, kind: input, shape index: {}]   ;;  %s4113_s5 = inlined_call_operand.vmem [shape: bf16[128,128], index: 5, kind: input, shape index: {}]   ;;  %s4114_s6 = inlined_call_operand.vmem [shape: f32[1,128], index: 6, kind: input, shape index: {}]   ;;  %s4115_s7 = inlined_call_operand.vmem [shape: f32[8,128], index: 7, kind: output, shape index: {}]  }
   0x1   :  { %13 = vsyncpa [#allocation9], 0  ;;  %s3366_s24 = smov 0   ;;  %s3368_s25 = smov 0  }
   0x2   :  { %s3370_s26 = smov 0  }
   0x3 LB: > { %s2596_s27 = sadd.s32 4294967295, %s3315_s26   ;;  %p2597_p0 = scmp.ge.s32.totalorder %s3315_s26, 1  ;;  %s3315_s26 = sphi %s3370_s26, %s19_s26   ;;  %s3311_s25 = sphi %s3368_s25, %s4170_s25   ;;  %s3307_s24 = sphi %s3366_s24, %s4169_s24  }
   0x4   : > { %p216_p1 = scmp.lt.s32.totalorder %s3315_s26, 3  ;;  %p3384_p2 = scmp.eq.s32.totalorder %s2596_s27, 0 }
   0x5   : > { %s3317_s30 = smov [#allocation8]   ;;  %s28_s10 = sadd.s32 1, %s3311_s25 }
   0x6   : > { %s4127_s28 = scalar_select %p3384_p2, 1, 0 }
   0x7   : > { %p3388_p3 = pnand %p2597_p0, %p216_p1  ;;  %s241_s8 = sshll.u32 %s3317_s30, 4  ;;  %s3392_s8 = int_to_ptr.vmem [resolvable:$true] %s241_s8 }
   0x8   : > { %p3403_p6 = scmp.ge.s32.totalorder %s28_s10, 2  ;;  %s3318_s12 = smov [#allocation6]  }
   0x9   : > { %s4128_s29 = scalar_select %p3388_p3, 1, 0 }
   0xa   : > { %p2820_p4 = pneg %p3388_p3  ;;  %s228_s13 = sshll.u32 %s3318_s12, 4  ;;  %s229_s13 = int_to_ptr.vmem [resolvable:$true] %s228_s13 }
   0xb   : > { %s3201_s16 = scalar_lea.hbm %s4110_s2, 4096 }
   0xc   : > { %p3398_p5 = pnand %p3384_p2, %p2820_p4  ;;  %p3202_p7 = scmp.ne.s32.totalorder %s4110_s2, %s3201_s16 }
   0xd   : > { %p3208_p11 = scmp.lt.u32.totalorder %s3201_s16, %s4110_s2 }
   0xe   : > { %p3415_p8 = pneg %p3398_p5 }
  0x10   : > { %p3204_p9 = pnand %p3415_p8, %p3202_p7 }
  0x12   : > { %p3205_p10 = pneg %p3204_p9 }
  0x14   : > { %p3210_p12 = pnand %p3208_p11, %p3205_p10 }
  0x16   : > { %3213 = shalt.err (!%p3210_p12)
}
  0x17   : > { %s3214_s22 = scalar_lea.vmem %s3392_s8, 4096  ;;  %p3222_p4 = scmp.lt.s32.totalorder %s3392_s8, %s3392_s8 }
  0x18   : > { %p3215_p13 = scmp.ne.s32.totalorder %s3392_s8, %s3214_s22  ;;  %p3223_p2 = scmp.lt.s32.totalorder %s3214_s22, %s3214_s22 }
  0x1a   : > { %p3217_p0 = pnand %p3215_p13, %p3415_p8  ;;  %p3224_p7 = por %p3223_p2, %p3222_p4 }
  0x1c   : > { %p3218_p1 = pneg %p3217_p0 }
  0x1e   : > { %p3225_p9 = pnand %p3224_p7, %p3218_p1 }
  0x20   : > { %3228 = shalt.err (!%p3225_p9)
}
  0x21   : > { %s3319_s23 = smov 256   ;;  %s3320_s27 = smov 16  }
  0x22   : > { %2826 = dma.hbm_to_vmem [thread:$0]  (!%p3398_p5), %s4110_s2, 4096, %s3392_s8, [#allocation9], %s3319_s23, %s3319_s23, %s3320_s27  }
  0x23   : > { %s4172_s10 = smov (%p3403_p6, %s28_s10), 0  ;;  %s3229_s16 = scalar_lea.hbm %s4109_s1, 4096 }
  0x24   : > { %p3230_p2 = scmp.ne.s32.totalorder %s4109_s1, %s3229_s16  ;;  %p3236_p12 = scmp.lt.u32.totalorder %s3229_s16, %s4109_s1 }
  0x26   : > { %p3232_p10 = pnand %p3230_p2, %p3415_p8 }
  0x28   : > { %p3233_p11 = pneg %p3232_p10 }
  0x2a   : > { %p3238_p13 = pnand %p3236_p12, %p3233_p11 }
  0x2c   : > { %3241 = shalt.err (!%p3238_p13)
}
  0x2d   : > { %s3242_s8 = scalar_lea.vmem %s229_s13, 4096  ;;  %p3250_p4 = scmp.lt.s32.totalorder %s229_s13, %s229_s13 }
  0x2e   : > { %p3243_p6 = scmp.ne.s32.totalorder %s229_s13, %s3242_s8  ;;  %p3251_p7 = scmp.lt.s32.totalorder %s3242_s8, %s3242_s8 }
  0x30   : > { %p3245_p0 = pnand %p3243_p6, %p3415_p8  ;;  %p3252_p9 = por %p3251_p7, %p3250_p4 }
  0x32   : > { %p3246_p1 = pneg %p3245_p0 }
  0x34   : > { %p3253_p3 = pnand %p3252_p9, %p3246_p1 }
  0x36   : > { %3256 = shalt.err (!%p3253_p3)
}
  0x37   : > { %2823 = dma.hbm_to_vmem [thread:$0]  (!%p3398_p5), %s4109_s1, 4096, %s229_s13, [#allocation7], %s3319_s23, %s3319_s23, %s3320_s27  }
  0x38   : > { %s3321_s30 = smov [#allocation10]   ;;  %s3257_s16 = scalar_lea.hbm %s4111_s3, 8192 }
  0x39   : > { %s254_s12 = sshll.u32 %s3321_s30, 4  ;;  %p3258_p3 = scmp.ne.s32.totalorder %s4111_s3, %s3257_s16  ;;  %s255_s12 = int_to_ptr.vmem [resolvable:$true] %s254_s12 }
  0x3a   : > { %p3264_p11 = scmp.lt.u32.totalorder %s3257_s16, %s4111_s3 }
  0x3b   : > { %p3260_p2 = pnand %p3258_p3, %p3415_p8 }
  0x3d   : > { %p3261_p10 = pneg %p3260_p2 }
  0x3f   : > { %p3266_p12 = pnand %p3264_p11, %p3261_p10 }
  0x41   : > { %3269 = shalt.err (!%p3266_p12)
}
  0x42   : > { %s3270_s13 = scalar_lea.vmem %s255_s12, 8192  ;;  %p3278_p1 = scmp.lt.s32.totalorder %s255_s12, %s255_s12 }
  0x43   : > { %p3271_p13 = scmp.ne.s32.totalorder %s255_s12, %s3270_s13  ;;  %p3279_p4 = scmp.lt.s32.totalorder %s3270_s13, %s3270_s13 }
  0x45   : > { %p3273_p6 = pnand %p3271_p13, %p3415_p8  ;;  %p3280_p7 = por %p3279_p4, %p3278_p1 }
  0x47   : > { %p3274_p0 = pneg %p3273_p6 }
  0x49   : > { %p3281_p9 = pnand %p3280_p7, %p3274_p0 }
  0x4b   : > { %3284 = shalt.err (!%p3281_p9)
}
  0x4c   : > { %2829 = dma.hbm_to_vmem [thread:$0]  (!%p3398_p5), %s4111_s3, 8192, %s255_s12, [#allocation9], %s3319_s23, %s3319_s23, %s3320_s27  }
  0x4d   : > { %p4132_p3 = scmp.ne.s32.totalorder %s4128_s29, 0 }
  0x4f   : > { %291 = sbr.rel (%p4132_p3) target bundleno = 2477 (0x9ad), region = 48 }
  0x56   : > { %p4133_p8 = scmp.ne.s32.totalorder %s4127_s28, 0 }
  0x58   : > { %3298 = dma.done.wait (%p4133_p8), [#allocation7], 4096  }
  0x59   : > { %3300 = vsyncadd (%p4133_p8), [#allocation7], 4294963200 }
  0x5a   : > { %3302 = dma.done.wait (%p4133_p8), [#allocation9], 12288  }
  0x5b   : > { %3304 = vsyncadd (%p4133_p8), [#allocation9], 4294955008  ;;  %s2606_s9 = sshll.u32 %s3307_s24, 2  ;;  %p2608_p5 = scmp.ne.s32.totalorder %s3307_s24, 0 }
  0x5c   : > { %p334_p2 = scmp.lt.s32.totalorder %s2606_s9, 7  ;;  %v3322_v0 = vmov (!%p2608_p5), 0.0  }
  0x5d   : > { %350 = sbr.rel (%p2608_p5) target bundleno = 100 (0x64), region = 64  ;;  %351 = vst [vmem:[#allocation2] sm:$0xff] (!%p2608_p5), %v3322_v0  ;;  %352 = vst [vmem:[#allocation2 + $0x8] sm:$0xff] (!%p2608_p5), %v3322_v0 }
  0x5e   : > { %s4174_s9 = smov (!%p334_p2, %s2606_s9), 7  ;;  %353 = vst [vmem:[#allocation3] sm:$0xff] (!%p2608_p5), %v3322_v0  ;;  %354 = vst [vmem:[#allocation3 + $0x8] sm:$0xff] (!%p2608_p5), %v3322_v0 }
  0x5f   : > { %s2607_s19 = sshll.u32 %s4174_s9, 2 }
  0x60   : > { %s3499_s27 = scalar_lea.vmem %s4108_s0, %s2607_s19 }
  0x64 PF: > { %v2869_v1 = vld [vmem:[#allocation6 + $0x4] ss:$16 sps:$4 sm:$0xff]   ;;  %v2871_v2 = vld [vmem:[#allocation6 + $0xc] ss:$16 sps:$4 sm:$0xff]   ;;  %v4123_v3 = vmov 0   ;;  %p2766_p10 = scmp.ne.s32.totalorder %s3307_s24, 1 }
  0x65   : > { %617 = vmatprep.mubr.bf16.mxu0 %v4123_v3  ;;  %670 = vmatprep.mubr.bf16.mxu1 %v4123_v3  ;;  %v2873_v4 = vld [vmem:[#allocation6] ss:$16 sps:$4 sm:$0xff]   ;;  %v2874_v5 = vld [vmem:[#allocation6 + $0x8] ss:$16 sps:$4 sm:$0xff]   ;;  %v2875_v6 = vld [vmem:[#allocation6 + $0x24] ss:$16 sps:$4 sm:$0xff]  }
  0x66   : > { %585 = vmatprep.subr.bf16.mxu0 %v2869_v1  ;;  %638 = vmatprep.subr.bf16.mxu1 %v2871_v2  ;;  %v2877_v7 = vld [vmem:[#allocation6 + $0x2c] ss:$16 sps:$4 sm:$0xff]   ;;  %v2879_v8 = vld [vmem:[#allocation6 + $0x20] ss:$16 sps:$4 sm:$0xff]   ;;  %v2880_v9 = vld [vmem:[#allocation6 + $0x28] ss:$16 sps:$4 sm:$0xff]  }
  0x67   : > { %586 = vmatpush1.bf16.msra.mxu0 %v2873_v4  ;;  %639 = vmatpush1.bf16.msra.mxu1 %v2874_v5  ;;  %v2881_v10 = vld [vmem:[#allocation6 + $0x44] ss:$16 sps:$4 sm:$0xff]   ;;  %v2883_v11 = vld [vmem:[#allocation6 + $0x4c] ss:$16 sps:$4 sm:$0xff]   ;;  %v2885_v12 = vld [vmem:[#allocation6 + $0x40] ss:$16 sps:$4 sm:$0xff]  }
  0x68   : > { %587 = vmatprep.subr.bf16.mxu0 %v2875_v6  ;;  %640 = vmatprep.subr.bf16.mxu1 %v2877_v7  ;;  %v2886_v13 = vld [vmem:[#allocation6 + $0x48] ss:$16 sps:$4 sm:$0xff]   ;;  %v2887_v14 = vld [vmem:[#allocation6 + $0x64] ss:$16 sps:$4 sm:$0xff]   ;;  %v2889_v15 = vld [vmem:[#allocation6 + $0x6c] ss:$16 sps:$4 sm:$0xff]   ;;  %v393_v7 = vlaneseq }
  0x69   : > { %v2891_v16 = vld [vmem:[#allocation6 + $0x60] ss:$16 sps:$4 sm:$0xff]   ;;  %v2892_v17 = vld [vmem:[#allocation6 + $0x68] ss:$16 sps:$4 sm:$0xff]   ;;  %v2893_v18 = vld [vmem:[#allocation6 + $0x84] ss:$16 sps:$4 sm:$0xff]  }
  0x6a   : > { %v2895_v19 = vld [vmem:[#allocation6 + $0x8c] ss:$16 sps:$4 sm:$0xff]   ;;  %v2897_v20 = vld [vmem:[#allocation6 + $0x80] ss:$16 sps:$4 sm:$0xff]   ;;  %v2898_v21 = vld [vmem:[#allocation6 + $0x88] ss:$16 sps:$4 sm:$0xff]  }
  0x6b   : > { %588 = vmatpush1.bf16.msra.mxu0 %v2879_v8  ;;  %641 = vmatpush1.bf16.msra.mxu1 %v2880_v9  ;;  %v2899_v22 = vld [vmem:[#allocation6 + $0xa4] ss:$16 sps:$4 sm:$0xff]   ;;  %v2901_v23 = vld [vmem:[#allocation6 + $0xac] ss:$16 sps:$4 sm:$0xff]   ;;  %v2903_v24 = vld [vmem:[#allocation6 + $0xa0] ss:$16 sps:$4 sm:$0xff]  }
  0x6c   : > { %589 = vmatprep.subr.bf16.mxu0 %v2881_v10  ;;  %642 = vmatprep.subr.bf16.mxu1 %v2883_v11  ;;  %v2904_v25 = vld [vmem:[#allocation6 + $0xa8] ss:$16 sps:$4 sm:$0xff]   ;;  %v2905_v26 = vld [vmem:[#allocation6 + $0xc4] ss:$16 sps:$4 sm:$0xff]   ;;  %v2907_v27 = vld [vmem:[#allocation6 + $0xcc] ss:$16 sps:$4 sm:$0xff]  }
  0x6d   : > { %v2909_v28 = vld [vmem:[#allocation6 + $0xc0] ss:$16 sps:$4 sm:$0xff]   ;;  %v2910_v29 = vld [vmem:[#allocation6 + $0xc8] ss:$16 sps:$4 sm:$0xff]   ;;  %v2911_v30 = vld [vmem:[#allocation6 + $0xe4] ss:$16 sps:$4 sm:$0xff]  }
  0x6e   : > { %v2913_v31 = vld [vmem:[#allocation6 + $0xec] ss:$16 sps:$4 sm:$0xff]   ;;  %v2915_v32 = vld [vmem:[#allocation6 + $0xe0] ss:$16 sps:$4 sm:$0xff]   ;;  %v2916_v33 = vld [vmem:[#allocation6 + $0xe8] ss:$16 sps:$4 sm:$0xff]  }
  0x6f   : > { %590 = vmatpush1.bf16.msra.mxu0 %v2885_v12  ;;  %643 = vmatpush1.bf16.msra.mxu1 %v2886_v13  ;;  %v3504_v34 = vld [vmem:[#allocation10 + $0x4] ss:$16 sps:$4 sm:$0xff]   ;;  %v3506_v35 = vld [vmem:[#allocation10 + $0xc] ss:$16 sps:$4 sm:$0xff]   ;;  %v3509_v37 = vld [vmem:[#allocation10] ss:$16 sps:$4 sm:$0xff]  }
  0x70   : > { %591 = vmatprep.subr.bf16.mxu0 %v2887_v14  ;;  %644 = vmatprep.subr.bf16.mxu1 %v2889_v15  ;;  %v2917_v36 = vld [vmem:[%s3499_s27] sm:$0xff]   ;;  %v3511_v38 = vld [vmem:[#allocation10 + $0x8] ss:$16 sps:$4 sm:$0xff]   ;;  %v3517_v40 = vld [vmem:[#allocation10 + $0x2c] ss:$16 sps:$4 sm:$0xff]   ;;  %v3642_v8 = vshrl.u32 %v393_v7, 7 }
  0x71   : > { %v3513_v39 = vld [vmem:[#allocation10 + $0x24] ss:$16 sps:$4 sm:$0xff]   ;;  %v3519_v41 = vld [vmem:[#allocation10 + $0x20] ss:$16 sps:$4 sm:$0xff]   ;;  %v3521_v42 = vld [vmem:[#allocation10 + $0x28] ss:$16 sps:$4 sm:$0xff]  }
  0x72   : > { %v3525_v43 = vld [vmem:[#allocation10 + $0x44] ss:$16 sps:$4 sm:$0xff]   ;;  %v3529_v44 = vld [vmem:[#allocation10 + $0x4c] ss:$16 sps:$4 sm:$0xff]   ;;  %v3531_v45 = vld [vmem:[#allocation10 + $0x40] ss:$16 sps:$4 sm:$0xff]  }
  0x73   : > { %592 = vmatpush1.bf16.msra.mxu0 %v2891_v16  ;;  %645 = vmatpush1.bf16.msra.mxu1 %v2892_v17  ;;  %v2952_v46 = vld [vmem:[%s3499_s27 + $0x8] sm:$0xff]   ;;  %v3542_v48 = vld [vmem:[#allocation10 + $0x64] ss:$16 sps:$4 sm:$0xff]   ;;  %v3548_v50 = vld [vmem:[#allocation10 + $0x60] ss:$16 sps:$4 sm:$0xff]   ;;  %4134 = vst [vmem:[#allocation13_spill] sm:$0xff] %v3642_v8 }
  0x74   : > { %593 = vmatprep.subr.bf16.mxu0 %v2893_v18  ;;  %646 = vmatprep.subr.bf16.mxu1 %v2895_v19  ;;  %v3538_v47 = vld [vmem:[#allocation10 + $0x48] ss:$16 sps:$4 sm:$0xff]   ;;  %v3544_v49 = vld [vmem:[#allocation10 + $0x6c] ss:$16 sps:$4 sm:$0xff]   ;;  %v3552_v52 = vld [vmem:[#allocation10 + $0x84] ss:$16 sps:$4 sm:$0xff]  }
  0x75   : > { %v3550_v51 = vld [vmem:[#allocation10 + $0x68] ss:$16 sps:$4 sm:$0xff]   ;;  %v3556_v53 = vld [vmem:[#allocation10 + $0x8c] ss:$16 sps:$4 sm:$0xff]   ;;  %v3558_v54 = vld [vmem:[#allocation10 + $0x80] ss:$16 sps:$4 sm:$0xff]  }
  0x76   : > { %v3560_v55 = vld [vmem:[#allocation10 + $0x88] ss:$16 sps:$4 sm:$0xff]   ;;  %v3564_v56 = vld [vmem:[#allocation10 + $0xa4] ss:$16 sps:$4 sm:$0xff]   ;;  %v3566_v57 = vld [vmem:[#allocation10 + $0xac] ss:$16 sps:$4 sm:$0xff]  }
  0x77   : > { %594 = vmatpush1.bf16.msra.mxu0 %v2897_v20  ;;  %647 = vmatpush1.bf16.msra.mxu1 %v2898_v21  ;;  %v3572_v58 = vld [vmem:[#allocation10 + $0xa0] ss:$16 sps:$4 sm:$0xff]   ;;  %v3574_v59 = vld [vmem:[#allocation10 + $0xa8] ss:$16 sps:$4 sm:$0xff]   ;;  %v3576_v60 = vld [vmem:[#allocation10 + $0xc4] ss:$16 sps:$4 sm:$0xff]  }
  0x78   : > { %595 = vmatprep.subr.bf16.mxu0 %v2899_v22  ;;  %648 = vmatprep.subr.bf16.mxu1 %v2901_v23  ;;  %v3578_v61 = vld [vmem:[#allocation10 + $0xcc] ss:$16 sps:$4 sm:$0xff]   ;;  %v3584_v62 = vld [vmem:[#allocation10 + $0xc0] ss:$16 sps:$4 sm:$0xff]   ;;  %v3586_v63 = vld [vmem:[#allocation10 + $0xc8] ss:$16 sps:$4 sm:$0xff]  }
  0x79   : > { %v3588_v0 = vld [vmem:[#allocation10 + $0xe4] ss:$16 sps:$4 sm:$0xff]   ;;  %v3590_v1 = vld [vmem:[#allocation10 + $0xec] ss:$16 sps:$4 sm:$0xff]   ;;  %v3596_v2 = vld [vmem:[#allocation10 + $0xe0] ss:$16 sps:$4 sm:$0xff]  }
  0x7a   : > { %v3598_v4 = vld [vmem:[#allocation10 + $0xe8] ss:$16 sps:$4 sm:$0xff]   ;;  %v739_v5 = vld [vmem:[#allocation2] sm:$0xff]  ;;  %v4122_v9 = vsub.s32 0, %v3642_v8  ;;  %v4121_v10 = vsub.s32 2, %v3642_v8  ;;  %v4119_v12 = vsub.s32 3, %v3642_v8 }
  0x7b   : > { %596 = vmatpush1.bf16.msra.mxu0 %v2903_v24  ;;  %649 = vmatpush1.bf16.msra.mxu1 %v2904_v25  ;;  %v745_v6 = vpack.c.bf16 %v739_v5, %v739_v5  ;;  %v391_v11 = vld [vmem:[%s4112_s4] sm:$0xf]  ;;  %v4120_v13 = vsub.s32 1, %v3642_v8  ;;  %vm3325_vm0 = vmmov (!%p2766_p10), 0  }
  0x7c   : > { %597 = vmatprep.subr.bf16.mxu0 %v2905_v26  ;;  %650 = vmatprep.subr.bf16.mxu1 %v2907_v27  ;;  %v396_v14 = vrot.slane %v391_v11, %v4122_v9  ;;  %v404_v15 = vrot.slane %v391_v11, %v4121_v10  ;;  %v408_v18 = vrot.slane %v391_v11, %v4119_v12 }
  0x7d   : > { %v400_v21 = vrot.slane %v391_v11, %v4120_v13 }
  0x7f   : > { %598 = vmatpush1.bf16.msra.mxu0 %v2909_v28  ;;  %651 = vmatpush1.bf16.msra.mxu1 %v2910_v29 }
  0x80   : > { %599 = vmatprep.subr.bf16.mxu0 %v2911_v30  ;;  %652 = vmatprep.subr.bf16.mxu1 %v2913_v31 }
  0x83   : > { %600 = vmatpush1.bf16.msra.mxu0 %v2915_v32  ;;  %653 = vmatpush1.bf16.msra.mxu1 %v2916_v33 }
  0x84   : > { %906 = vmatprep.subr.bf16.mxu0 %v3504_v34  ;;  %947 = vmatprep.subr.bf16.mxu1 %v3506_v35 }
  0x86   : > { %618 = vmatmul.mubr.bf16.vlgmr.msra.gmra.mrb[0].mxu0 %v2917_v36  ;;  %671 = vmatmul.mubr.bf16.vlgmr.msra.gmra.mrb[0].mxu1 %v2917_v36 }
  0x87   : > { %907 = vmatpush1.bf16.msra.mxu0 %v3509_v37  ;;  %948 = vmatpush1.bf16.msra.mxu1 %v3511_v38 }
  0x88   : > { %908 = vmatprep.subr.bf16.mxu0 %v3513_v39  ;;  %949 = vmatprep.subr.bf16.mxu1 %v3517_v40 }
  0x89   : > { %627 = vmatprep.mubr.bf16.mxu0 %v4123_v3  ;;  %680 = vmatprep.mubr.bf16.mxu1 %v4123_v3 }
  0x8b   : > { %909 = vmatpush1.bf16.msra.mxu0 %v3519_v41  ;;  %950 = vmatpush1.bf16.msra.mxu1 %v3521_v42 }
  0x8c   : > { %910 = vmatprep.subr.bf16.mxu0 %v3525_v43  ;;  %951 = vmatprep.subr.bf16.mxu1 %v3529_v44 }
  0x8e   : > { %628 = vmatmul.mubr.bf16.gmra.mrb[4].mxu0 %v2952_v46  ;;  %681 = vmatmul.mubr.bf16.gmra.mrb[4].mxu1 %v2952_v46 }
  0x8f   : > { %911 = vmatpush1.bf16.msra.mxu0 %v3531_v45  ;;  %952 = vmatpush1.bf16.msra.mxu1 %v3538_v47 }
  0x90   : > { %912 = vmatprep.subr.bf16.mxu0 %v3542_v48  ;;  %953 = vmatprep.subr.bf16.mxu1 %v3544_v49 }
  0x91   : > { %938 = vmatprep.mubr.bf16.mxu0 %v4123_v3  ;;  %979 = vmatprep.mubr.bf16.mxu1 %v4123_v3 }
  0x93   : > { %913 = vmatpush1.bf16.msra.mxu0 %v3548_v50  ;;  %954 = vmatpush1.bf16.msra.mxu1 %v3550_v51 }
  0x94   : > { %914 = vmatprep.subr.bf16.mxu0 %v3552_v52  ;;  %955 = vmatprep.subr.bf16.mxu1 %v3556_v53 }
  0x97   : > { %915 = vmatpush1.bf16.msra.mxu0 %v3558_v54  ;;  %956 = vmatpush1.bf16.msra.mxu1 %v3560_v55 }
  0x98   : > { %916 = vmatprep.subr.bf16.mxu0 %v3564_v56  ;;  %957 = vmatprep.subr.bf16.mxu1 %v3566_v57 }
  0x9b   : > { %917 = vmatpush1.bf16.msra.mxu0 %v3572_v58  ;;  %958 = vmatpush1.bf16.msra.mxu1 %v3574_v59 }
  0x9c   : > { %918 = vmatprep.subr.bf16.mxu0 %v3576_v60  ;;  %959 = vmatprep.subr.bf16.mxu1 %v3578_v61 }
  0x9f   : > { %919 = vmatpush1.bf16.msra.mxu0 %v3584_v62  ;;  %960 = vmatpush1.bf16.msra.mxu1 %v3586_v63 }
  0xa0   : > { %920 = vmatprep.subr.bf16.mxu0 %v3588_v0  ;;  %961 = vmatprep.subr.bf16.mxu1 %v3590_v1 }
  0xa3   : > { %921 = vmatpush1.bf16.msra.mxu0 %v3596_v2  ;;  %962 = vmatpush1.bf16.msra.mxu1 %v3598_v4 }
  0xa4   : > { %1023 = vmatprep.subr.bf16.mxu0 %v3504_v34  ;;  %1064 = vmatprep.subr.bf16.mxu1 %v3506_v35 }
  0xa6   : > { %939 = vmatmul.mubr.bf16.vlgmr.msra.gmra.mrb[8].mxu0 %v745_v6  ;;  %980 = vmatmul.mubr.bf16.vlgmr.msra.gmra.mrb[8].mxu1 %v745_v6 }
  0xa7   : > { %1024 = vmatpush1.bf16.msra.mxu0 %v3509_v37  ;;  %1065 = vmatpush1.bf16.msra.mxu1 %v3511_v38 }
  0xa8   : > { %1025 = vmatprep.subr.bf16.mxu0 %v3513_v39  ;;  %1066 = vmatprep.subr.bf16.mxu1 %v3517_v40 }
  0xa9   : > { %1055 = vmatprep.mubr.bf16.mxu0 %v4123_v3  ;;  %1096 = vmatprep.mubr.bf16.mxu1 %v4123_v3 }
  0xab   : > { %1026 = vmatpush1.bf16.msra.mxu0 %v3519_v41  ;;  %1067 = vmatpush1.bf16.msra.mxu1 %v3521_v42 }
  0xac   : > { %1027 = vmatprep.subr.bf16.mxu0 %v3525_v43  ;;  %1068 = vmatprep.subr.bf16.mxu1 %v3529_v44 }
  0xaf   : > { %1028 = vmatpush1.bf16.msra.mxu0 %v3531_v45  ;;  %1069 = vmatpush1.bf16.msra.mxu1 %v3538_v47 }
  0xb0   : > { %1029 = vmatprep.subr.bf16.mxu0 %v3542_v48  ;;  %1070 = vmatprep.subr.bf16.mxu1 %v3544_v49 }
  0xb3   : > { %1030 = vmatpush1.bf16.msra.mxu0 %v3548_v50  ;;  %1071 = vmatpush1.bf16.msra.mxu1 %v3550_v51 }
  0xb4   : > { %1031 = vmatprep.subr.bf16.mxu0 %v3552_v52  ;;  %1072 = vmatprep.subr.bf16.mxu1 %v3556_v53 }
  0xb7   : > { %1032 = vmatpush1.bf16.msra.mxu0 %v3558_v54  ;;  %1073 = vmatpush1.bf16.msra.mxu1 %v3560_v55 }
  0xb8   : > { %1033 = vmatprep.subr.bf16.mxu0 %v3564_v56  ;;  %1074 = vmatprep.subr.bf16.mxu1 %v3566_v57 }
  0xbb   : > { %1034 = vmatpush1.bf16.msra.mxu0 %v3572_v58  ;;  %1075 = vmatpush1.bf16.msra.mxu1 %v3574_v59 }
  0xbc   : > { %1035 = vmatprep.subr.bf16.mxu0 %v3576_v60  ;;  %1076 = vmatprep.subr.bf16.mxu1 %v3578_v61 }
  0xbf   : > { %1036 = vmatpush1.bf16.msra.mxu0 %v3584_v62  ;;  %1077 = vmatpush1.bf16.msra.mxu1 %v3586_v63 }
  0xc0   : > { %1037 = vmatprep.subr.bf16.mxu0 %v3588_v0  ;;  %1078 = vmatprep.subr.bf16.mxu1 %v3590_v1 }
  0xc3   : > { %1038 = vmatpush1.bf16.msra.mxu0 %v3596_v2  ;;  %1079 = vmatpush1.bf16.msra.mxu1 %v3598_v4 }
  0xc4   : > { %1141 = vmatprep.subr.bf16.mxu0 %v3504_v34  ;;  %1182 = vmatprep.subr.bf16.mxu1 %v3506_v35 }
 0x159   : > { %v619_v16 = vpop.f32.mrb[0].mxu0  ;;  %v672_v17 = vpop.f32.mrb[0].mxu1 }
 0x15a   : > { %v621_v19 = vpop.f32.mrb[1].mxu0  ;;  %v674_v20 = vpop.f32.mrb[1].mxu1  ;;  %v620_v13 = vadd.f32 %v619_v16, %v396_v14 }
 0x15b   : > { %v623_v22 = vpop.f32.mrb[2].mxu0  ;;  %v676_v23 = vpop.f32.mrb[2].mxu1  ;;  %v622_v10 = vadd.f32 %v621_v19, %v400_v21  ;;  %v675_v9 = vadd.f32 %v674_v20, %v408_v18 }
 0x15c   : > { %v3659_v24 = vadd.f32 %v623_v22, %v396_v14  ;;  %v625_v25 = vpop.f32.mrb[3].mxu0  ;;  %v3661_v26 = vadd.f32 %v676_v23, %v404_v15  ;;  %v678_v27 = vpop.f32.mrb[3].mxu1 }
 0x15d   : > { %v3663_v28 = vadd.f32 %v625_v25, %v400_v21  ;;  %v3665_v29 = vadd.f32 %v678_v27, %v408_v18 }
 0x161   : > { %v629_v30 = vpop.f32.mrb[4].mxu0  ;;  %v682_v31 = vpop.f32.mrb[4].mxu1 }
 0x162   : > { %v3667_v32 = vadd.f32 %v629_v30, %v396_v14  ;;  %v631_v33 = vpop.f32.mrb[5].mxu0  ;;  %v3669_v36 = vadd.f32 %v682_v31, %v404_v15  ;;  %v684_v46 = vpop.f32.mrb[5].mxu1  ;;  %v673_v31 = vadd.f32 %v672_v17, %v404_v15 }
 0x163   : > { %v3671_v5 = vadd.f32 %v631_v33, %v400_v21  ;;  %v633_v6 = vpop.f32.mrb[6].mxu0  ;;  %v3673_v7 = vadd.f32 %v684_v46, %v408_v18  ;;  %v686_v11 = vpop.f32.mrb[6].mxu1 }
 0x164   : > { %4135 = vst [vmem:[#allocation14_spill] sm:$0xff] %v3667_v32  ;;  %4136 = vst [vmem:[#allocation15_spill] sm:$0xff] %v3669_v36  ;;  %v3675_v22 = vadd.f32 %v633_v6, %v396_v14  ;;  %v635_v23 = vpop.f32.mrb[7].mxu0  ;;  %v3677_v25 = vadd.f32 %v686_v11, %v404_v15  ;;  %v688_v27 = vpop.f32.mrb[7].mxu1 }
 0x165   : > { %4137 = vst [vmem:[#allocation16_spill] sm:$0xff] %v3671_v5  ;;  %4138 = vst [vmem:[#allocation17_spill] sm:$0xff] %v3673_v7  ;;  %v3679_v12 = vadd.f32 %v635_v23, %v400_v21  ;;  %v3681_v30 = vadd.f32 %v688_v27, %v408_v18  ;;  %v740_v18 = vld [vmem:[#allocation3] sm:$0xff] }
 0x166   : > { %4139 = vst [vmem:[#allocation18_spill] sm:$0xff] %v3675_v22  ;;  %4140 = vst [vmem:[#allocation19_spill] sm:$0xff] %v3677_v25 }
 0x167   : > { %4141 = vst [vmem:[#allocation20_spill] sm:$0xff] %v3679_v12 }
 0x179   : > { %v940_v33 = vpop.f32.mrb[8].mxu0  ;;  %v981_v3 = vpop.f32.mrb[8].mxu1 }
 0x17a   : > { %v988_v8 = vadd.f32 %v940_v33, %v620_v13  ;;  %v990_v46 = vadd.f32 %v981_v3, %v673_v31  ;;  %v942_v7 = vpop.f32.mrb[9].mxu0  ;;  %v983_v5 = vpop.f32.mrb[9].mxu1 }
 0x17b   : > { %v989_v6 = vadd.f32 %v942_v7, %v622_v10  ;;  %v991_v22 = vadd.f32 %v983_v5, %v675_v9  ;;  %v944_v36 = vpop.f32.mrb[10].mxu0  ;;  %v985_v11 = vpop.f32.mrb[10].mxu1 }
 0x17c   : > { %v2675_v25 = vmul.f32 -1.442695, %v988_v8  ;;  %v945_v32 = vpop.f32.mrb[11].mxu0  ;;  %v986_v23 = vpop.f32.mrb[11].mxu1  ;;  %v2677_v14 = vmul.f32 -1.442695, %v990_v46 }
 0x17d   : > { %v2676_v12 = vmul.f32 -1.442695, %v989_v6 }
 0x17e   : > { %3065 = vpow2.f32 %v2675_v25 }
 0x17f   : > { %3067 = vpow2.f32 %v2676_v12 }
 0x180   : > { %3069 = vtanh.f32 %v991_v22  ;;  %v4142_v22 = vmov 0  }
 0x181   : > { %3071 = vpow2.f32 %v2677_v14 }
 0x188   : > { %v3066_v15 = vpop.eup %3065 }
 0x189   : > { %v1001_v16 = vadd.f32 1.0, %v3066_v15  ;;  %v3068_v17 = vpop.eup %3067 }
 0x18a   : > { %v1002_v3 = vadd.f32 1.0, %v3068_v17  ;;  %v3070_v13 = vpop.eup %3069 }
 0x18b   : > { %3073 = vrcp.f32 %v1001_v16  ;;  %v3072_v10 = vpop.eup %3071 }
 0x18c   : > { %3075 = vrcp.f32 %v1002_v3  ;;  %v1003_v20 = vadd.f32 1.0, %v3072_v10 }
 0x18e   : > { %3077 = vrcp.f32 %v1003_v20 }
 0x195   : > { %v3074_v9 = vpop.eup %3073 }
 0x196   : > { %v1012_v19 = vmul.f32 %v3074_v9, %v3070_v13  ;;  %v3076_v8 = vpop.eup %3075 }
 0x197   : > { %v1011_v21 = vmul.f32 %v3076_v8, %v740_v18 }
 0x198   : > { %v3078_v12 = vpop.eup %3077 }
 0x199   : > { %v3683_v32 = vadd.f32 %v1012_v19, %v1011_v21 }
 0x19b   : > { %3079 = vtanh.f32 %v3683_v32 }
 0x1a5   : > { %v3080_v36 = vpop.eup %3079 }
 0x1a6   : > { %v1015_v5 = vmul.f32 %v3080_v36, %v3078_v12 }
 0x1a8   : > { %v1016_v7 = vpack.c.bf16 %v1015_v5, %v1015_v5 }
 0x1aa   : > { %1017 = vst [vmem:[#allocation5] sm:$0xf] %v1016_v7  ;;  %1056 = vmatmul.mubr.bf16.vlgmr.msra.gmra.mrb[12].mxu0 %v1016_v7  ;;  %1097 = vmatmul.mubr.bf16.vlgmr.msra.gmra.mrb[12].mxu1 %v1016_v7 }
 0x1ab   : > { %1142 = vmatpush1.bf16.msra.mxu0 %v3509_v37  ;;  %1183 = vmatpush1.bf16.msra.mxu1 %v3511_v38 }
 0x1ac   : > { %1143 = vmatprep.subr.bf16.mxu0 %v3513_v39  ;;  %1184 = vmatprep.subr.bf16.mxu1 %v3517_v40 }
 0x1ad   : > { %1173 = vmatprep.mubr.bf16.mxu0 %v4142_v22  ;;  %1214 = vmatprep.mubr.bf16.mxu1 %v4142_v22 }
 0x1af   : > { %1144 = vmatpush1.bf16.msra.mxu0 %v3519_v41  ;;  %1185 = vmatpush1.bf16.msra.mxu1 %v3521_v42 }
 0x1b0   : > { %1145 = vmatprep.subr.bf16.mxu0 %v3525_v43  ;;  %1186 = vmatprep.subr.bf16.mxu1 %v3529_v44 }
 0x1b3   : > { %1146 = vmatpush1.bf16.msra.mxu0 %v3531_v45  ;;  %1187 = vmatpush1.bf16.msra.mxu1 %v3538_v47 }
 0x1b4   : > { %1147 = vmatprep.subr.bf16.mxu0 %v3542_v48  ;;  %1188 = vmatprep.subr.bf16.mxu1 %v3544_v49 }
 0x1b7   : > { %1148 = vmatpush1.bf16.msra.mxu0 %v3548_v50  ;;  %1189 = vmatpush1.bf16.msra.mxu1 %v3550_v51 }
 0x1b8   : > { %1149 = vmatprep.subr.bf16.mxu0 %v3552_v52  ;;  %1190 = vmatprep.subr.bf16.mxu1 %v3556_v53 }
 0x1bb   : > { %1150 = vmatpush1.bf16.msra.mxu0 %v3558_v54  ;;  %1191 = vmatpush1.bf16.msra.mxu1 %v3560_v55 }
 0x1bc   : > { %1151 = vmatprep.subr.bf16.mxu0 %v3564_v56  ;;  %1192 = vmatprep.subr.bf16.mxu1 %v3566_v57 }
 0x1bf   : > { %1152 = vmatpush1.bf16.msra.mxu0 %v3572_v58  ;;  %1193 = vmatpush1.bf16.msra.mxu1 %v3574_v59 }
 0x1c0   : > { %1153 = vmatprep.subr.bf16.mxu0 %v3576_v60  ;;  %1194 = vmatprep.subr.bf16.mxu1 %v3578_v61 }
 0x1c3   : > { %1154 = vmatpush1.bf16.msra.mxu0 %v3584_v62  ;;  %1195 = vmatpush1.bf16.msra.mxu1 %v3586_v63 }
 0x1c4   : > { %1155 = vmatprep.subr.bf16.mxu0 %v3588_v0  ;;  %1196 = vmatprep.subr.bf16.mxu1 %v3590_v1 }
 0x1c7   : > { %1156 = vmatpush1.bf16.msra.mxu0 %v3596_v2  ;;  %1197 = vmatpush1.bf16.msra.mxu1 %v3598_v4 }
 0x1c8   : > { %1259 = vmatprep.subr.bf16.mxu0 %v3504_v34  ;;  %1300 = vmatprep.subr.bf16.mxu1 %v3506_v35 }
 0x27d   : > { %v1057_v25 = vpop.f32.mrb[12].mxu0  ;;  %v1098_v27 = vpop.f32.mrb[12].mxu1 }
 0x27e   : > { %v1105_v31 = vadd.f32 %v1057_v25, %v3659_v24  ;;  %v1107_v33 = vadd.f32 %v1098_v27, %v3661_v26  ;;  %v1059_v46 = vpop.f32.mrb[13].mxu0  ;;  %v1100_v6 = vpop.f32.mrb[13].mxu1 }
 0x27f   : > { %v1106_v11 = vadd.f32 %v1059_v46, %v3663_v28  ;;  %v1108_v23 = vadd.f32 %v1100_v6, %v3665_v29  ;;  %v1061_v14 = vpop.f32.mrb[14].mxu0  ;;  %v1102_v15 = vpop.f32.mrb[14].mxu1  ;;  %v2967_v6 = vld [vmem:[#allocation8] ss:$16 sps:$4 sm:$0xff]  }
 0x280   : > { %v2678_v16 = vmul.f32 -1.442695, %v1105_v31  ;;  %v1062_v17 = vpop.f32.mrb[15].mxu0  ;;  %v1103_v3 = vpop.f32.mrb[15].mxu1  ;;  %v2680_v35 = vmul.f32 -1.442695, %v1107_v33 }
 0x281   : > { %v2679_v34 = vmul.f32 -1.442695, %v1106_v11  ;;  %v2970_v11 = vld [vmem:[#allocation8 + $0x8] ss:$16 sps:$4 sm:$0xff]   ;;  %v2975_v14 = vld [vmem:[#allocation8 + $0x24] ss:$16 sps:$4 sm:$0xff]  }
 0x282   : > { %3081 = vpow2.f32 %v2678_v16  ;;  %v2978_v15 = vld [vmem:[#allocation8 + $0x2c] ss:$16 sps:$4 sm:$0xff]   ;;  %v2973_v16 = vld [vmem:[#allocation8 + $0x20] ss:$16 sps:$4 sm:$0xff]   ;;  %v2976_v17 = vld [vmem:[#allocation8 + $0x28] ss:$16 sps:$4 sm:$0xff]  }
 0x283   : > { %3083 = vpow2.f32 %v2679_v34  ;;  %v2981_v3 = vld [vmem:[#allocation8 + $0x44] ss:$16 sps:$4 sm:$0xff]   ;;  %v2984_v34 = vld [vmem:[#allocation8 + $0x4c] ss:$16 sps:$4 sm:$0xff]  }
 0x284   : > { %3085 = vtanh.f32 %v1108_v23 }
 0x285   : > { %3087 = vpow2.f32 %v2680_v35  ;;  %v2979_v35 = vld [vmem:[#allocation8 + $0x40] ss:$16 sps:$4 sm:$0xff]  }
 0x28c   : > { %v3082_v13 = vpop.eup %3081 }
 0x28d   : > { %v1118_v10 = vadd.f32 1.0, %v3082_v13  ;;  %v3084_v24 = vpop.eup %3083  ;;  %v2982_v13 = vld [vmem:[#allocation8 + $0x48] ss:$16 sps:$4 sm:$0xff]  }
 0x28e   : > { %v1119_v26 = vadd.f32 1.0, %v3084_v24  ;;  %v3086_v28 = vpop.eup %3085  ;;  %v2990_v24 = vld [vmem:[#allocation8 + $0x6c] ss:$16 sps:$4 sm:$0xff]  }
 0x28f   : > { %3089 = vrcp.f32 %v1118_v10  ;;  %v3088_v9 = vpop.eup %3087  ;;  %v2987_v10 = vld [vmem:[#allocation8 + $0x64] ss:$16 sps:$4 sm:$0xff]  }
 0x290   : > { %3091 = vrcp.f32 %v1119_v26  ;;  %v1120_v8 = vadd.f32 1.0, %v3088_v9  ;;  %v2985_v26 = vld [vmem:[#allocation8 + $0x60] ss:$16 sps:$4 sm:$0xff]   ;;  %v2993_v9 = vld [vmem:[#allocation8 + $0x84] ss:$16 sps:$4 sm:$0xff]  }
 0x292   : > { %3093 = vrcp.f32 %v1120_v8  ;;  %v2999_v8 = vld [vmem:[#allocation8 + $0xa4] ss:$16 sps:$4 sm:$0xff]  }
 0x299   : > { %v3090_v29 = vpop.eup %3089 }
 0x29a   : > { %v1129_v18 = vmul.f32 %v3090_v29, %v3086_v28  ;;  %v3092_v19 = vpop.eup %3091  ;;  %v2988_v28 = vld [vmem:[#allocation8 + $0x68] ss:$16 sps:$4 sm:$0xff]   ;;  %v2996_v29 = vld [vmem:[#allocation8 + $0x8c] ss:$16 sps:$4 sm:$0xff]  }
 0x29b   : > { %v1128_v20 = vmul.f32 %v3092_v19, %v3683_v32  ;;  %v2994_v19 = vld [vmem:[#allocation8 + $0x88] ss:$16 sps:$4 sm:$0xff]  }
 0x29c   : > { %v3094_v12 = vpop.eup %3093 }
 0x29d   : > { %v3725_v21 = vadd.f32 %v1129_v18, %v1128_v20  ;;  %v2991_v18 = vld [vmem:[#allocation8 + $0x80] ss:$16 sps:$4 sm:$0xff]   ;;  %v3002_v20 = vld [vmem:[#allocation8 + $0xac] ss:$16 sps:$4 sm:$0xff]  }
 0x29f   : > { %3095 = vtanh.f32 %v3725_v21 }
 0x2a9   : > { %v3096_v36 = vpop.eup %3095 }
 0x2aa   : > { %v1132_v5 = vmul.f32 %v3096_v36, %v3094_v12  ;;  %v3000_v12 = vld [vmem:[#allocation8 + $0xa8] ss:$16 sps:$4 sm:$0xff]   ;;  %v3005_v36 = vld [vmem:[#allocation8 + $0xc4] ss:$16 sps:$4 sm:$0xff]  }
 0x2ac   : > { %v1133_v7 = vpack.c.bf16 %v1132_v5, %v1132_v5  ;;  %v3008_v5 = vld [vmem:[#allocation8 + $0xcc] ss:$16 sps:$4 sm:$0xff]  }
 0x2ae   : > { %1135 = vst [vmem:[#allocation5 + $0x4] sm:$0xf] %v1133_v7  ;;  %1174 = vmatmul.mubr.bf16.vlgmr.msra.gmra.mrb[16].mxu0 %v1133_v7  ;;  %1215 = vmatmul.mubr.bf16.vlgmr.msra.gmra.mrb[16].mxu1 %v1133_v7  ;;  %v3003_v7 = vld [vmem:[#allocation8 + $0xc0] ss:$16 sps:$4 sm:$0xff]  }
 0x2af   : > { %1260 = vmatpush1.bf16.msra.mxu0 %v3509_v37  ;;  %1301 = vmatpush1.bf16.msra.mxu1 %v3511_v38  ;;  %v2969_v37 = vld [vmem:[#allocation8 + $0x4] ss:$16 sps:$4 sm:$0xff]   ;;  %v2972_v38 = vld [vmem:[#allocation8 + $0xc] ss:$16 sps:$4 sm:$0xff]  }
 0x2b0   : > { %1261 = vmatprep.subr.bf16.mxu0 %v3513_v39  ;;  %1302 = vmatprep.subr.bf16.mxu1 %v3517_v40 }
 0x2b1   : > { %1291 = vmatprep.mubr.bf16.mxu0 %v4142_v22  ;;  %1332 = vmatprep.mubr.bf16.mxu1 %v4142_v22 }
 0x2b3   : > { %1262 = vmatpush1.bf16.msra.mxu0 %v3519_v41  ;;  %1303 = vmatpush1.bf16.msra.mxu1 %v3521_v42  ;;  %v4143_v41 = vld [vmem:[#allocation14_spill] sm:$0xff] }
 0x2b4   : > { %1263 = vmatprep.subr.bf16.mxu0 %v3525_v43  ;;  %1304 = vmatprep.subr.bf16.mxu1 %v3529_v44  ;;  %v4144_v43 = vld [vmem:[#allocation15_spill] sm:$0xff] }
 0x2b7   : > { %1264 = vmatpush1.bf16.msra.mxu0 %v3531_v45  ;;  %1305 = vmatpush1.bf16.msra.mxu1 %v3538_v47 }
 0x2b8   : > { %1265 = vmatprep.subr.bf16.mxu0 %v3542_v48  ;;  %1306 = vmatprep.subr.bf16.mxu1 %v3544_v49  ;;  %v4145_v48 = vld [vmem:[#allocation16_spill] sm:$0xff] }
 0x2bb   : > { %1266 = vmatpush1.bf16.msra.mxu0 %v3548_v50  ;;  %1307 = vmatpush1.bf16.msra.mxu1 %v3550_v51  ;;  %v4146_v50 = vld [vmem:[#allocation17_spill] sm:$0xff] }
 0x2bc   : > { %1267 = vmatprep.subr.bf16.mxu0 %v3552_v52  ;;  %1308 = vmatprep.subr.bf16.mxu1 %v3556_v53 }
 0x2bf   : > { %1268 = vmatpush1.bf16.msra.mxu0 %v3558_v54  ;;  %1309 = vmatpush1.bf16.msra.mxu1 %v3560_v55 }
 0x2c0   : > { %1269 = vmatprep.subr.bf16.mxu0 %v3564_v56  ;;  %1310 = vmatprep.subr.bf16.mxu1 %v3566_v57 }
 0x2c3   : > { %1270 = vmatpush1.bf16.msra.mxu0 %v3572_v58  ;;  %1311 = vmatpush1.bf16.msra.mxu1 %v3574_v59 }
 0x2c4   : > { %1271 = vmatprep.subr.bf16.mxu0 %v3576_v60  ;;  %1312 = vmatprep.subr.bf16.mxu1 %v3578_v61 }
 0x2c7   : > { %1272 = vmatpush1.bf16.msra.mxu0 %v3584_v62  ;;  %1313 = vmatpush1.bf16.msra.mxu1 %v3586_v63 }
 0x2c8   : > { %1273 = vmatprep.subr.bf16.mxu0 %v3588_v0  ;;  %1314 = vmatprep.subr.bf16.mxu1 %v3590_v1 }
 0x2cb   : > { %1274 = vmatpush1.bf16.msra.mxu0 %v3596_v2  ;;  %1315 = vmatpush1.bf16.msra.mxu1 %v3598_v4 }
 0x2cc   : > { %1605 = vmatprep.subr.bf16.mxu0 %v2969_v37  ;;  %1658 = vmatprep.subr.bf16.mxu1 %v2972_v38  ;;  %v3006_v37 = vld [vmem:[#allocation8 + $0xc8] ss:$16 sps:$4 sm:$0xff]   ;;  %v3011_v38 = vld [vmem:[#allocation8 + $0xe4] ss:$16 sps:$4 sm:$0xff]  }
 0x381   : > { %v1175_v39 = vpop.f32.mrb[16].mxu0  ;;  %v1216_v40 = vpop.f32.mrb[16].mxu1 }
 0x382   : > { %v1223_v42 = vadd.f32 %v1175_v39, %v4143_v41  ;;  %v1225_v44 = vadd.f32 %v1216_v40, %v4144_v43  ;;  %v1177_v45 = vpop.f32.mrb[17].mxu0  ;;  %v1218_v47 = vpop.f32.mrb[17].mxu1  ;;  %v3014_v39 = vld [vmem:[#allocation8 + $0xec] ss:$16 sps:$4 sm:$0xff]   ;;  %v3009_v40 = vld [vmem:[#allocation8 + $0xe0] ss:$16 sps:$4 sm:$0xff]  }
 0x383   : > { %v1224_v49 = vadd.f32 %v1177_v45, %v4145_v48  ;;  %v1226_v51 = vadd.f32 %v1218_v47, %v4146_v50  ;;  %v1179_v52 = vpop.f32.mrb[18].mxu0  ;;  %v1220_v53 = vpop.f32.mrb[18].mxu1  ;;  %v3012_v41 = vld [vmem:[#allocation8 + $0xe8] ss:$16 sps:$4 sm:$0xff]   ;;  %v3772_v43 = vld [vmem:[#allocation10 + $0x104] ss:$16 sps:$4 sm:$0xff]  }
 0x384   : > { %v2681_v54 = vmul.f32 -1.442695, %v1223_v42  ;;  %v1180_v55 = vpop.f32.mrb[19].mxu0  ;;  %v1221_v56 = vpop.f32.mrb[19].mxu1  ;;  %v2683_v58 = vmul.f32 -1.442695, %v1225_v44 }
 0x385   : > { %v2682_v57 = vmul.f32 -1.442695, %v1224_v49  ;;  %v3015_v42 = vld [vmem:[#allocation5] sm:$0xff]   ;;  %v3774_v44 = vld [vmem:[#allocation10 + $0x10c] ss:$16 sps:$4 sm:$0xff]  }
 0x386   : > { %3097 = vpow2.f32 %v2681_v54  ;;  %v3776_v45 = vld [vmem:[#allocation10 + $0x100] ss:$16 sps:$4 sm:$0xff]   ;;  %v3778_v47 = vld [vmem:[#allocation10 + $0x108] ss:$16 sps:$4 sm:$0xff]   ;;  %v3784_v48 = vld [vmem:[#allocation10 + $0x124] ss:$16 sps:$4 sm:$0xff]  }
 0x387   : > { %3099 = vpow2.f32 %v2682_v57  ;;  %v3786_v49 = vld [vmem:[#allocation10 + $0x12c] ss:$16 sps:$4 sm:$0xff]   ;;  %v3788_v50 = vld [vmem:[#allocation10 + $0x120] ss:$16 sps:$4 sm:$0xff]   ;;  %v3796_v52 = vld [vmem:[#allocation10 + $0x144] ss:$16 sps:$4 sm:$0xff]  }
 0x388   : > { %3101 = vtanh.f32 %v1226_v51  ;;  %v3790_v51 = vld [vmem:[#allocation10 + $0x128] ss:$16 sps:$4 sm:$0xff]   ;;  %v3798_v53 = vld [vmem:[#allocation10 + $0x14c] ss:$16 sps:$4 sm:$0xff]   ;;  %v3800_v54 = vld [vmem:[#allocation10 + $0x140] ss:$16 sps:$4 sm:$0xff]  }
 0x389   : > { %3103 = vpow2.f32 %v2683_v58  ;;  %v3802_v55 = vld [vmem:[#allocation10 + $0x148] ss:$16 sps:$4 sm:$0xff]   ;;  %v3808_v56 = vld [vmem:[#allocation10 + $0x164] ss:$16 sps:$4 sm:$0xff]   ;;  %v3810_v57 = vld [vmem:[#allocation10 + $0x16c] ss:$16 sps:$4 sm:$0xff]  }
 0x38a   : > { %v3812_v58 = vld [vmem:[#allocation10 + $0x160] ss:$16 sps:$4 sm:$0xff]  }
 0x390   : > { %v3098_v59 = vpop.eup %3097 }
 0x391   : > { %v1236_v60 = vadd.f32 1.0, %v3098_v59  ;;  %v3100_v61 = vpop.eup %3099  ;;  %v3814_v59 = vld [vmem:[#allocation10 + $0x168] ss:$16 sps:$4 sm:$0xff]  }
 0x392   : > { %v1237_v62 = vadd.f32 1.0, %v3100_v61  ;;  %v3102_v63 = vpop.eup %3101  ;;  %v3822_v61 = vld [vmem:[#allocation10 + $0x18c] ss:$16 sps:$4 sm:$0xff]  }
 0x393   : > { %3105 = vrcp.f32 %v1236_v60  ;;  %v3104_v0 = vpop.eup %3103  ;;  %v3820_v60 = vld [vmem:[#allocation10 + $0x184] ss:$16 sps:$4 sm:$0xff]  }
 0x394   : > { %3107 = vrcp.f32 %v1237_v62  ;;  %v1238_v32 = vadd.f32 1.0, %v3104_v0  ;;  %v3824_v62 = vld [vmem:[#allocation10 + $0x180] ss:$16 sps:$4 sm:$0xff]   ;;  %v3828_v0 = vld [vmem:[#allocation10 + $0x1a4] ss:$16 sps:$4 sm:$0xff]  }
 0x396   : > { %3109 = vrcp.f32 %v1238_v32  ;;  %v3844_v32 = vld [vmem:[#allocation10 + $0x1c4] ss:$16 sps:$4 sm:$0xff]  }
 0x39d   : > { %v3106_v1 = vpop.eup %3105 }
 0x39e   : > { %v1247_v2 = vmul.f32 %v3106_v1, %v3102_v63  ;;  %v3108_v4 = vpop.eup %3107  ;;  %v3826_v63 = vld [vmem:[#allocation10 + $0x188] ss:$16 sps:$4 sm:$0xff]   ;;  %v3832_v1 = vld [vmem:[#allocation10 + $0x1ac] ss:$16 sps:$4 sm:$0xff]  }
 0x39f   : > { %v1246_v25 = vmul.f32 %v3108_v4, %v3725_v21  ;;  %v2997_v21 = vld [vmem:[#allocation8 + $0xa0] ss:$16 sps:$4 sm:$0xff]   ;;  %v3838_v4 = vld [vmem:[#allocation10 + $0x1a8] ss:$16 sps:$4 sm:$0xff]  }
 0x3a0   : > { %v3110_v31 = vpop.eup %3109 }
 0x3a1   : > { %v3765_v27 = vadd.f32 %v1247_v2, %v1246_v25  ;;  %v3836_v2 = vld [vmem:[#allocation10 + $0x1a0] ss:$16 sps:$4 sm:$0xff]   ;;  %v3846_v25 = vld [vmem:[#allocation10 + $0x1cc] ss:$16 sps:$4 sm:$0xff]  }
 0x3a3   : > { %3111 = vtanh.f32 %v3765_v27 }
 0x3ad   : > { %v3112_v33 = vpop.eup %3111 }
 0x3ae   : > { %v1250_v46 = vmul.f32 %v3112_v33, %v3110_v31  ;;  %v3848_v31 = vld [vmem:[#allocation10 + $0x1c0] ss:$16 sps:$4 sm:$0xff]   ;;  %v3850_v33 = vld [vmem:[#allocation10 + $0x1c8] ss:$16 sps:$4 sm:$0xff]  }
 0x3b0   : > { %v1251_v23 = vpack.c.bf16 %v1250_v46, %v1250_v46  ;;  %v3854_v46 = vld [vmem:[#allocation10 + $0x1e4] ss:$16 sps:$4 sm:$0xff]  }
 0x3b2   : > { %1253 = vst [vmem:[#allocation5 + $0x8] sm:$0xf] %v1251_v23  ;;  %1292 = vmatmul.mubr.bf16.vlgmr.msra.gmra.mrb[20].mxu0 %v1251_v23  ;;  %1333 = vmatmul.mubr.bf16.vlgmr.msra.gmra.mrb[20].mxu1 %v1251_v23  ;;  %v3862_v23 = vld [vmem:[#allocation10 + $0x1e8] ss:$16 sps:$4 sm:$0xff]  }
 0x3b3   : > { %1606 = vmatpush1.bf16.msra.mxu0 %v2967_v6  ;;  %1659 = vmatpush1.bf16.msra.mxu1 %v2970_v11  ;;  %v3856_v6 = vld [vmem:[#allocation10 + $0x1ec] ss:$16 sps:$4 sm:$0xff]   ;;  %v3860_v11 = vld [vmem:[#allocation10 + $0x1e0] ss:$16 sps:$4 sm:$0xff]  }
 0x3b4   : > { %1607 = vmatprep.subr.bf16.mxu0 %v2975_v14  ;;  %1660 = vmatprep.subr.bf16.mxu1 %v2978_v15 }
 0x3b5   : > { %1637 = vmatprep.mubr.bf16.mxu0 %v4142_v22  ;;  %1690 = vmatprep.mubr.bf16.mxu1 %v4142_v22 }
 0x3b7   : > { %1608 = vmatpush1.bf16.msra.mxu0 %v2973_v16  ;;  %1661 = vmatpush1.bf16.msra.mxu1 %v2976_v17  ;;  %v4147_v16 = vld [vmem:[#allocation18_spill] sm:$0xff] }
 0x3b8   : > { %1609 = vmatprep.subr.bf16.mxu0 %v2981_v3  ;;  %1662 = vmatprep.subr.bf16.mxu1 %v2984_v34  ;;  %v4148_v3 = vld [vmem:[#allocation19_spill] sm:$0xff] }
 0x3bb   : > { %1610 = vmatpush1.bf16.msra.mxu0 %v2979_v35  ;;  %1663 = vmatpush1.bf16.msra.mxu1 %v2982_v13 }
 0x3bc   : > { %1611 = vmatprep.subr.bf16.mxu0 %v2987_v10  ;;  %1664 = vmatprep.subr.bf16.mxu1 %v2990_v24  ;;  %v4149_v10 = vld [vmem:[#allocation20_spill] sm:$0xff] }
 0x3bf   : > { %1612 = vmatpush1.bf16.msra.mxu0 %v2985_v26  ;;  %1665 = vmatpush1.bf16.msra.mxu1 %v2988_v28 }
 0x3c0   : > { %1613 = vmatprep.subr.bf16.mxu0 %v2993_v9  ;;  %1666 = vmatprep.subr.bf16.mxu1 %v2996_v29 }
 0x3c3   : > { %1614 = vmatpush1.bf16.msra.mxu0 %v2991_v18  ;;  %1667 = vmatpush1.bf16.msra.mxu1 %v2994_v19 }
 0x3c4   : > { %1615 = vmatprep.subr.bf16.mxu0 %v2999_v8  ;;  %1668 = vmatprep.subr.bf16.mxu1 %v3002_v20 }
 0x3c7   : > { %1616 = vmatpush1.bf16.msra.mxu0 %v2997_v21  ;;  %1669 = vmatpush1.bf16.msra.mxu1 %v3000_v12 }
 0x3c8   : > { %1617 = vmatprep.subr.bf16.mxu0 %v3005_v36  ;;  %1670 = vmatprep.subr.bf16.mxu1 %v3008_v5 }
 0x3cb   : > { %1618 = vmatpush1.bf16.msra.mxu0 %v3003_v7  ;;  %1671 = vmatpush1.bf16.msra.mxu1 %v3006_v37 }
 0x3cc   : > { %1619 = vmatprep.subr.bf16.mxu0 %v3011_v38  ;;  %1672 = vmatprep.subr.bf16.mxu1 %v3014_v39 }
 0x3cf   : > { %1620 = vmatpush1.bf16.msra.mxu0 %v3009_v40  ;;  %1673 = vmatpush1.bf16.msra.mxu1 %v3012_v41 }
 0x3d0   : > { %1929 = vmatprep.subr.bf16.mxu0 %v3772_v43  ;;  %1970 = vmatprep.subr.bf16.mxu1 %v3774_v44 }
 0x3d2   : > { %1638 = vmatmul.mubr.bf16.vlgmr.msra.gmra.mrb[24].mxu0 %v3015_v42  ;;  %1691 = vmatmul.mubr.bf16.vlgmr.msra.gmra.mrb[24].mxu1 %v3015_v42 }
 0x3d3   : > { %1647 = vmatprep.mubr.bf16.mxu0 %v4142_v22  ;;  %1700 = vmatprep.mubr.bf16.mxu1 %v4142_v22 }
 0x3d4   : > { %1930 = vmatpush1.bf16.msra.mxu0 %v3776_v45  ;;  %1971 = vmatpush1.bf16.msra.mxu1 %v3778_v47 }
 0x3d5   : > { %1931 = vmatprep.subr.bf16.mxu0 %v3784_v48  ;;  %1972 = vmatprep.subr.bf16.mxu1 %v3786_v49 }
 0x3d8   : > { %1932 = vmatpush1.bf16.msra.mxu0 %v3788_v50  ;;  %1973 = vmatpush1.bf16.msra.mxu1 %v3790_v51 }
 0x3d9   : > { %1933 = vmatprep.subr.bf16.mxu0 %v3796_v52  ;;  %1974 = vmatprep.subr.bf16.mxu1 %v3798_v53 }
 0x3dc   : > { %1934 = vmatpush1.bf16.msra.mxu0 %v3800_v54  ;;  %1975 = vmatpush1.bf16.msra.mxu1 %v3802_v55 }
 0x3dd   : > { %1935 = vmatprep.subr.bf16.mxu0 %v3808_v56  ;;  %1976 = vmatprep.subr.bf16.mxu1 %v3810_v57 }
 0x3e0   : > { %1936 = vmatpush1.bf16.msra.mxu0 %v3812_v58  ;;  %1977 = vmatpush1.bf16.msra.mxu1 %v3814_v59 }
 0x3e1   : > { %1937 = vmatprep.subr.bf16.mxu0 %v3820_v60  ;;  %1978 = vmatprep.subr.bf16.mxu1 %v3822_v61 }
 0x3e4   : > { %1938 = vmatpush1.bf16.msra.mxu0 %v3824_v62  ;;  %1979 = vmatpush1.bf16.msra.mxu1 %v3826_v63 }
 0x3e5   : > { %1939 = vmatprep.subr.bf16.mxu0 %v3828_v0  ;;  %1980 = vmatprep.subr.bf16.mxu1 %v3832_v1 }
 0x3e8   : > { %1940 = vmatpush1.bf16.msra.mxu0 %v3836_v2  ;;  %1981 = vmatpush1.bf16.msra.mxu1 %v3838_v4 }
 0x3e9   : > { %1941 = vmatprep.subr.bf16.mxu0 %v3844_v32  ;;  %1982 = vmatprep.subr.bf16.mxu1 %v3846_v25 }
 0x3ec   : > { %1942 = vmatpush1.bf16.msra.mxu0 %v3848_v31  ;;  %1983 = vmatpush1.bf16.msra.mxu1 %v3850_v33 }
 0x3ed   : > { %1943 = vmatprep.subr.bf16.mxu0 %v3854_v46  ;;  %1984 = vmatprep.subr.bf16.mxu1 %v3856_v6 }
 0x3f0   : > { %1944 = vmatpush1.bf16.msra.mxu0 %v3860_v11  ;;  %1985 = vmatpush1.bf16.msra.mxu1 %v3862_v23 }
 0x3f1   : > { %2044 = vmatprep.subr.bf16.mxu0 %v3772_v43  ;;  %2085 = vmatprep.subr.bf16.mxu1 %v3774_v44 }
 0x485   : > { %v1293_v14 = vpop.f32.mrb[20].mxu0  ;;  %v1334_v15 = vpop.f32.mrb[20].mxu1 }
 0x486   : > { %v1341_v17 = vadd.f32 %v1293_v14, %v4147_v16  ;;  %v1343_v34 = vadd.f32 %v1334_v15, %v4148_v3  ;;  %v1295_v35 = vpop.f32.mrb[21].mxu0  ;;  %v1336_v13 = vpop.f32.mrb[21].mxu1 }
 0x487   : > { %v1342_v24 = vadd.f32 %v1295_v35, %v4149_v10  ;;  %v1344_v26 = vadd.f32 %v1336_v13, %v3681_v30  ;;  %v1297_v28 = vpop.f32.mrb[22].mxu0  ;;  %v1338_v9 = vpop.f32.mrb[22].mxu1 }
 0x488   : > { %v2684_v29 = vmul.f32 -1.442695, %v1341_v17  ;;  %v1298_v18 = vpop.f32.mrb[23].mxu0  ;;  %v1339_v19 = vpop.f32.mrb[23].mxu1  ;;  %v2686_v20 = vmul.f32 -1.442695, %v1343_v34 }
 0x489   : > { %v2685_v8 = vmul.f32 -1.442695, %v1342_v24  ;;  %v1761_v9 = vld [vmem:[#allocation2 + $0x8] sm:$0xff]  ;;  %v2687_v18 = vld [vmem:[%s4112_s4 + $0x4] sm:$0xf] }
 0x48a   : > { %3113 = vpow2.f32 %v2684_v29  ;;  %v1768_v29 = vpack.c.bf16 %v1761_v9, %v1761_v9 }
 0x48b   : > { %3115 = vpow2.f32 %v2685_v8 }
 0x48c   : > { %3117 = vtanh.f32 %v1344_v26 }
 0x48d   : > { %3119 = vpow2.f32 %v2686_v20 }
 0x494   : > { %v3114_v21 = vpop.eup %3113 }
 0x495   : > { %v1354_v12 = vadd.f32 1.0, %v3114_v21  ;;  %v3116_v36 = vpop.eup %3115 }
 0x496   : > { %v1355_v5 = vadd.f32 1.0, %v3116_v36  ;;  %v3118_v7 = vpop.eup %3117 }
 0x497   : > { %3121 = vrcp.f32 %v1354_v12  ;;  %v3120_v37 = vpop.eup %3119 }
 0x498   : > { %3123 = vrcp.f32 %v1355_v5  ;;  %v1356_v40 = vadd.f32 1.0, %v3120_v37  ;;  %v4155_v5 = vld [vmem:[#allocation13_spill] sm:$0xff] }
 0x49a   : > { %3125 = vrcp.f32 %v1356_v40 }
 0x4a1   : > { %v3122_v30 = vpop.eup %3121 }
 0x4a2   : > { %v1365_v38 = vmul.f32 %v3122_v30, %v3118_v7  ;;  %v3124_v39 = vpop.eup %3123  ;;  %v4156_v7 = vsub.s32 0, %v4155_v5  ;;  %v4157_v30 = vsub.s32 2, %v4155_v5 }
 0x4a3   : > { %v1364_v41 = vmul.f32 %v3124_v39, %v3765_v27 }
 0x4a4   : > { %v3126_v27 = vpop.eup %3125  ;;  %v3944_v37 = vrot.slane %v2687_v18, %v4156_v7 }
 0x4a5   : > { %v3875_v42 = vpop.f32.mrb[24].mxu0  ;;  %v3877_v14 = vpop.f32.mrb[24].mxu1  ;;  %v1366_v15 = vadd.f32 %v1365_v38, %v1364_v41  ;;  %v3948_v38 = vrot.slane %v2687_v18, %v4157_v30  ;;  %v4160_v41 = vsub.s32 1, %v4155_v5 }
 0x4a6   : > { %v3879_v16 = vpop.f32.mrb[25].mxu0  ;;  %v3881_v17 = vpop.f32.mrb[25].mxu1 }
 0x4a7   : > { %v3883_v3 = vpop.f32.mrb[26].mxu0  ;;  %v3885_v34 = vpop.f32.mrb[26].mxu1  ;;  %3127 = vtanh.f32 %v1366_v15  ;;  %1373 = vst [vmem:[#allocation3] sm:$0xff] %v1366_v15  ;;  %v3956_v15 = vrot.slane %v2687_v18, %v4160_v41 }
 0x4a8   : > { %v3887_v35 = vpop.f32.mrb[27].mxu0  ;;  %v3889_v13 = vpop.f32.mrb[27].mxu1 }
 0x4b1   : > { %v3128_v10 = vpop.eup %3127 }
 0x4b2   : > { %v1368_v24 = vmul.f32 %v3128_v10, %v3126_v27  ;;  %v4161_v27 = vsub.s32 3, %v4155_v5 }
 0x4b4   : > { %v1369_v26 = vpack.c.bf16 %v1368_v24, %v1368_v24  ;;  %1372 = vst [vmem:[#allocation2] sm:$0xff] %v1368_v24  ;;  %v3960_v10 = vrot.slane %v2687_v18, %v4161_v27  ;;  %v1640_v24 = vadd.f32 %v3875_v42, %v3944_v37 }
 0x4b6   : > { %1371 = vst [vmem:[#allocation5 + $0xc] sm:$0xf] %v1369_v26  ;;  %v1693_v26 = vadd.f32 %v3877_v14, %v3948_v38  ;;  %v1695_v9 = vadd.f32 %v3881_v17, %v3960_v10 }
 0x4bd   : > { %v3052_v28 = vld [vmem:[#allocation5 + $0x8] sm:$0xff]  }
 0x4be   : > { %1648 = vmatmul.mubr.bf16.gmra.mrb[28].mxu0 %v3052_v28  ;;  %1701 = vmatmul.mubr.bf16.gmra.mrb[28].mxu1 %v3052_v28  ;;  %v1642_v28 = vadd.f32 %v3879_v16, %v3956_v15 }
 0x4bf   : > { %1961 = vmatprep.mubr.bf16.mxu0 %v4142_v22  ;;  %2002 = vmatprep.mubr.bf16.mxu1 %v4142_v22 }
 0x4c6   : > { %1962 = vmatmul.mubr.bf16.vlgmr.msra.gmra.mrb[32].mxu0 %v1768_v29  ;;  %2003 = vmatmul.mubr.bf16.vlgmr.msra.gmra.mrb[32].mxu1 %v1768_v29 }
 0x4c7   : > { %2045 = vmatpush1.bf16.msra.mxu0 %v3776_v45  ;;  %2086 = vmatpush1.bf16.msra.mxu1 %v3778_v47 }
 0x4c8   : > { %2046 = vmatprep.subr.bf16.mxu0 %v3784_v48  ;;  %2087 = vmatprep.subr.bf16.mxu1 %v3786_v49 }
 0x4c9   : > { %2076 = vmatprep.mubr.bf16.mxu0 %v4142_v22  ;;  %2117 = vmatprep.mubr.bf16.mxu1 %v4142_v22 }
 0x4cb   : > { %2047 = vmatpush1.bf16.msra.mxu0 %v3788_v50  ;;  %2088 = vmatpush1.bf16.msra.mxu1 %v3790_v51 }
 0x4cc   : > { %2048 = vmatprep.subr.bf16.mxu0 %v3796_v52  ;;  %2089 = vmatprep.subr.bf16.mxu1 %v3798_v53 }
 0x4cf   : > { %2049 = vmatpush1.bf16.msra.mxu0 %v3800_v54  ;;  %2090 = vmatpush1.bf16.msra.mxu1 %v3802_v55 }
 0x4d0   : > { %2050 = vmatprep.subr.bf16.mxu0 %v3808_v56  ;;  %2091 = vmatprep.subr.bf16.mxu1 %v3810_v57 }
 0x4d3   : > { %2051 = vmatpush1.bf16.msra.mxu0 %v3812_v58  ;;  %2092 = vmatpush1.bf16.msra.mxu1 %v3814_v59 }
 0x4d4   : > { %2052 = vmatprep.subr.bf16.mxu0 %v3820_v60  ;;  %2093 = vmatprep.subr.bf16.mxu1 %v3822_v61 }
 0x4d7   : > { %2053 = vmatpush1.bf16.msra.mxu0 %v3824_v62  ;;  %2094 = vmatpush1.bf16.msra.mxu1 %v3826_v63 }
 0x4d8   : > { %2054 = vmatprep.subr.bf16.mxu0 %v3828_v0  ;;  %2095 = vmatprep.subr.bf16.mxu1 %v3832_v1 }
 0x4db   : > { %2055 = vmatpush1.bf16.msra.mxu0 %v3836_v2  ;;  %2096 = vmatpush1.bf16.msra.mxu1 %v3838_v4 }
 0x4dc   : > { %2056 = vmatprep.subr.bf16.mxu0 %v3844_v32  ;;  %2097 = vmatprep.subr.bf16.mxu1 %v3846_v25 }
 0x4df   : > { %2057 = vmatpush1.bf16.msra.mxu0 %v3848_v31  ;;  %2098 = vmatpush1.bf16.msra.mxu1 %v3850_v33 }
 0x4e0   : > { %2058 = vmatprep.subr.bf16.mxu0 %v3854_v46  ;;  %2099 = vmatprep.subr.bf16.mxu1 %v3856_v6 }
 0x4e3   : > { %2059 = vmatpush1.bf16.msra.mxu0 %v3860_v11  ;;  %2100 = vmatpush1.bf16.msra.mxu1 %v3862_v23 }
 0x4e4   : > { %2159 = vmatprep.subr.bf16.mxu0 %v3772_v43  ;;  %2200 = vmatprep.subr.bf16.mxu1 %v3774_v44 }
 0x591   : > { %v3930_v19 = vpop.f32.mrb[28].mxu0  ;;  %v3932_v8 = vpop.f32.mrb[28].mxu1 }
 0x592   : > { %4150 = vst [vmem:[#allocation14_spill] sm:$0xff] %v3932_v8  ;;  %v3934_v20 = vpop.f32.mrb[29].mxu0  ;;  %v3936_v21 = vpop.f32.mrb[29].mxu1 }
 0x593   : > { %4151 = vst [vmem:[#allocation15_spill] sm:$0xff] %v3934_v20  ;;  %4152 = vst [vmem:[#allocation16_spill] sm:$0xff] %v3936_v21  ;;  %v3938_v12 = vpop.f32.mrb[30].mxu0  ;;  %v3940_v36 = vpop.f32.mrb[30].mxu1 }
 0x594   : > { %4153 = vst [vmem:[#allocation17_spill] sm:$0xff] %v3938_v12  ;;  %4154 = vst [vmem:[#allocation18_spill] sm:$0xff] %v3940_v36  ;;  %v3950_v39 = vpop.f32.mrb[31].mxu0  ;;  %v3952_v40 = vpop.f32.mrb[31].mxu1 }
 0x595   : > { %4158 = vst [vmem:[#allocation19_spill] sm:$0xff] %v3950_v39  ;;  %4159 = vst [vmem:[#allocation20_spill] sm:$0xff] %v3952_v40 }
 0x599   : > { %v1963_v29 = vpop.f32.mrb[32].mxu0  ;;  %v2004_v7 = vpop.f32.mrb[32].mxu1 }
 0x59a   : > { %v2011_v30 = vadd.f32 %v1963_v29, %v1640_v24  ;;  %v2013_v41 = vadd.f32 %v2004_v7, %v1693_v26  ;;  %v1965_v40 = vpop.f32.mrb[33].mxu0  ;;  %v2006_v5 = vpop.f32.mrb[33].mxu1 }
 0x59b   : > { %v2012_v18 = vadd.f32 %v1965_v40, %v1642_v28  ;;  %v2014_v27 = vadd.f32 %v2006_v5, %v1695_v9  ;;  %v1967_v39 = vpop.f32.mrb[34].mxu0  ;;  %v2008_v36 = vpop.f32.mrb[34].mxu1  ;;  %v1697_v5 = vadd.f32 %v3885_v34, %v3948_v38 }
 0x59c   : > { %v2754_v42 = vmul.f32 -1.442695, %v2011_v30  ;;  %v1968_v12 = vpop.f32.mrb[35].mxu0  ;;  %v2009_v21 = vpop.f32.mrb[35].mxu1  ;;  %v2756_v16 = vmul.f32 -1.442695, %v2013_v41 }
 0x59d   : > { %v2755_v14 = vmul.f32 -1.442695, %v2012_v18  ;;  %v1763_v39 = vld [vmem:[#allocation3 + $0x8] sm:$0xff]  ;;  %v1646_v18 = vadd.f32 %v3887_v35, %v3956_v15 }
 0x59e   : > { %3129 = vpow2.f32 %v2754_v42 }
 0x59f   : > { %3131 = vpow2.f32 %v2755_v14 }
 0x5a0   : > { %3133 = vtanh.f32 %v2014_v27  ;;  %v1699_v27 = vadd.f32 %v3889_v13, %v3960_v10 }
 0x5a1   : > { %3135 = vpow2.f32 %v2756_v16 }
 0x5a8   : > { %v3130_v20 = vpop.eup %3129 }
 0x5a9   : > { %v2024_v8 = vadd.f32 1.0, %v3130_v20  ;;  %v3132_v17 = vpop.eup %3131 }
 0x5aa   : > { %v2025_v24 = vadd.f32 1.0, %v3132_v17  ;;  %v3134_v26 = vpop.eup %3133 }
 0x5ab   : > { %3137 = vrcp.f32 %v2024_v8  ;;  %v3136_v40 = vpop.eup %3135  ;;  %v1644_v8 = vadd.f32 %v3883_v3, %v3944_v37 }
 0x5ac   : > { %3139 = vrcp.f32 %v2025_v24  ;;  %v2026_v12 = vadd.f32 1.0, %v3136_v40 }
 0x5ae   : > { %3141 = vrcp.f32 %v2026_v12 }
 0x5b5   : > { %v3138_v28 = vpop.eup %3137 }
 0x5b6   : > { %v2035_v36 = vmul.f32 %v3138_v28, %v3134_v26  ;;  %v3140_v9 = vpop.eup %3139 }
 0x5b7   : > { %v2034_v21 = vmul.f32 %v3140_v9, %v1763_v39 }
 0x5b8   : > { %v3142_v20 = vpop.eup %3141 }
 0x5b9   : > { %v3970_v29 = vadd.f32 %v2035_v36, %v2034_v21 }
 0x5bb   : > { %3143 = vtanh.f32 %v3970_v29 }
 0x5c5   : > { %v3144_v7 = vpop.eup %3143 }
 0x5c6   : > { %v2038_v30 = vmul.f32 %v3144_v7, %v3142_v20 }
 0x5c8   : > { %v2043_v41 = vpack.c.bf16 %v2038_v30, %v2038_v30 }
 0x5ca   : > { %2077 = vmatmul.mubr.bf16.vlgmr.msra.gmra.mrb[36].mxu0 %v2043_v41  ;;  %2118 = vmatmul.mubr.bf16.vlgmr.msra.gmra.mrb[36].mxu1 %v2043_v41 }
 0x5cb   : > { %2160 = vmatpush1.bf16.msra.mxu0 %v3776_v45  ;;  %2201 = vmatpush1.bf16.msra.mxu1 %v3778_v47 }
 0x5cc   : > { %2161 = vmatprep.subr.bf16.mxu0 %v3784_v48  ;;  %2202 = vmatprep.subr.bf16.mxu1 %v3786_v49 }
 0x5cd   : > { %2191 = vmatprep.mubr.bf16.mxu0 %v4142_v22  ;;  %2232 = vmatprep.mubr.bf16.mxu1 %v4142_v22 }
 0x5cf   : > { %2162 = vmatpush1.bf16.msra.mxu0 %v3788_v50  ;;  %2203 = vmatpush1.bf16.msra.mxu1 %v3790_v51 }
 0x5d0   : > { %2163 = vmatprep.subr.bf16.mxu0 %v3796_v52  ;;  %2204 = vmatprep.subr.bf16.mxu1 %v3798_v53 }
 0x5d3   : > { %2164 = vmatpush1.bf16.msra.mxu0 %v3800_v54  ;;  %2205 = vmatpush1.bf16.msra.mxu1 %v3802_v55 }
 0x5d4   : > { %2165 = vmatprep.subr.bf16.mxu0 %v3808_v56  ;;  %2206 = vmatprep.subr.bf16.mxu1 %v3810_v57 }
 0x5d7   : > { %2166 = vmatpush1.bf16.msra.mxu0 %v3812_v58  ;;  %2207 = vmatpush1.bf16.msra.mxu1 %v3814_v59 }
 0x5d8   : > { %2167 = vmatprep.subr.bf16.mxu0 %v3820_v60  ;;  %2208 = vmatprep.subr.bf16.mxu1 %v3822_v61 }
 0x5db   : > { %2168 = vmatpush1.bf16.msra.mxu0 %v3824_v62  ;;  %2209 = vmatpush1.bf16.msra.mxu1 %v3826_v63 }
 0x5dc   : > { %2169 = vmatprep.subr.bf16.mxu0 %v3828_v0  ;;  %2210 = vmatprep.subr.bf16.mxu1 %v3832_v1 }
 0x5df   : > { %2170 = vmatpush1.bf16.msra.mxu0 %v3836_v2  ;;  %2211 = vmatpush1.bf16.msra.mxu1 %v3838_v4 }
 0x5e0   : > { %2171 = vmatprep.subr.bf16.mxu0 %v3844_v32  ;;  %2212 = vmatprep.subr.bf16.mxu1 %v3846_v25 }
 0x5e3   : > { %2172 = vmatpush1.bf16.msra.mxu0 %v3848_v31  ;;  %2213 = vmatpush1.bf16.msra.mxu1 %v3850_v33 }
 0x5e4   : > { %2173 = vmatprep.subr.bf16.mxu0 %v3854_v46  ;;  %2214 = vmatprep.subr.bf16.mxu1 %v3856_v6 }
 0x5e7   : > { %2174 = vmatpush1.bf16.msra.mxu0 %v3860_v11  ;;  %2215 = vmatpush1.bf16.msra.mxu1 %v3862_v23 }
 0x5e8   : > { %2274 = vmatprep.subr.bf16.mxu0 %v3772_v43  ;;  %2315 = vmatprep.subr.bf16.mxu1 %v3774_v44 }
 0x69d   : > { %v2078_v42 = vpop.f32.mrb[36].mxu0  ;;  %v2119_v14 = vpop.f32.mrb[36].mxu1 }
 0x69e   : > { %v2126_v16 = vadd.f32 %v2078_v42, %v1644_v8  ;;  %v2128_v17 = vadd.f32 %v2119_v14, %v1697_v5  ;;  %v2080_v24 = vpop.f32.mrb[37].mxu0  ;;  %v2121_v43 = vpop.f32.mrb[37].mxu1 }
 0x69f   : > { %v2127_v26 = vadd.f32 %v2080_v24, %v1646_v18  ;;  %v2129_v44 = vadd.f32 %v2121_v43, %v1699_v27  ;;  %v2082_v40 = vpop.f32.mrb[38].mxu0  ;;  %v2123_v28 = vpop.f32.mrb[38].mxu1 }
 0x6a0   : > { %v2757_v3 = vmul.f32 -1.442695, %v2126_v16  ;;  %v2083_v39 = vpop.f32.mrb[39].mxu0  ;;  %v2124_v36 = vpop.f32.mrb[39].mxu1  ;;  %v2759_v35 = vmul.f32 -1.442695, %v2128_v17 }
 0x6a1   : > { %v2758_v34 = vmul.f32 -1.442695, %v2127_v26  ;;  %v4165_v28 = vld [vmem:[#allocation17_spill] sm:$0xff]  ;;  %v4166_v39 = vld [vmem:[#allocation18_spill] sm:$0xff] }
 0x6a2   : > { %3145 = vpow2.f32 %v2757_v3  ;;  %v1654_v3 = vadd.f32 %v4165_v28, %v3944_v37  ;;  %v1707_v36 = vadd.f32 %v4166_v39, %v3948_v38 }
 0x6a3   : > { %3147 = vpow2.f32 %v2758_v34  ;;  %v4167_v34 = vld [vmem:[#allocation19_spill] sm:$0xff] }
 0x6a4   : > { %3149 = vtanh.f32 %v2129_v44 }
 0x6a5   : > { %3151 = vpow2.f32 %v2759_v35  ;;  %v1656_v35 = vadd.f32 %v4167_v34, %v3956_v15 }
 0x6ac   : > { %v3146_v9 = vpop.eup %3145 }
 0x6ad   : > { %v2139_v12 = vadd.f32 1.0, %v3146_v9  ;;  %v3148_v13 = vpop.eup %3147  ;;  %v4168_v9 = vld [vmem:[#allocation20_spill] sm:$0xff] }
 0x6ae   : > { %v2140_v21 = vadd.f32 1.0, %v3148_v13  ;;  %v3150_v20 = vpop.eup %3149 }
 0x6af   : > { %3153 = vrcp.f32 %v2139_v12  ;;  %v3152_v7 = vpop.eup %3151  ;;  %v1709_v12 = vadd.f32 %v4168_v9, %v3960_v10 }
 0x6b0   : > { %3155 = vrcp.f32 %v2140_v21  ;;  %v2141_v5 = vadd.f32 1.0, %v3152_v7 }
 0x6b2   : > { %3157 = vrcp.f32 %v2141_v5 }
 0x6b9   : > { %v3154_v30 = vpop.eup %3153 }
 0x6ba   : > { %v2150_v41 = vmul.f32 %v3154_v30, %v3150_v20  ;;  %v3156_v8 = vpop.eup %3155 }
 0x6bb   : > { %v2149_v18 = vmul.f32 %v3156_v8, %v3970_v29 }
 0x6bc   : > { %v3158_v42 = vpop.eup %3157 }
 0x6bd   : > { %v4016_v27 = vadd.f32 %v2150_v41, %v2149_v18 }
 0x6bf   : > { %3159 = vtanh.f32 %v4016_v27 }
 0x6c9   : > { %v3160_v14 = vpop.eup %3159 }
 0x6ca   : > { %v2153_v16 = vmul.f32 %v3160_v14, %v3158_v42 }
 0x6cc   : > { %v2158_v17 = vpack.c.bf16 %v2153_v16, %v2153_v16 }
 0x6ce   : > { %2192 = vmatmul.mubr.bf16.vlgmr.msra.gmra.mrb[40].mxu0 %v2158_v17  ;;  %2233 = vmatmul.mubr.bf16.vlgmr.msra.gmra.mrb[40].mxu1 %v2158_v17 }
 0x6cf   : > { %2275 = vmatpush1.bf16.msra.mxu0 %v3776_v45  ;;  %2316 = vmatpush1.bf16.msra.mxu1 %v3778_v47  ;;  %v4162_v45 = vld [vmem:[#allocation14_spill] sm:$0xff] }
 0x6d0   : > { %2276 = vmatprep.subr.bf16.mxu0 %v3784_v48  ;;  %2317 = vmatprep.subr.bf16.mxu1 %v3786_v49  ;;  %v1703_v47 = vadd.f32 %v4162_v45, %v3948_v38  ;;  %v4163_v48 = vld [vmem:[#allocation15_spill] sm:$0xff] }
 0x6d1   : > { %2306 = vmatprep.mubr.bf16.mxu0 %v4142_v22  ;;  %2347 = vmatprep.mubr.bf16.mxu1 %v4142_v22  ;;  %v1650_v22 = vadd.f32 %v3930_v19, %v3944_v37  ;;  %v1652_v49 = vadd.f32 %v4163_v48, %v3956_v15 }
 0x6d3   : > { %2277 = vmatpush1.bf16.msra.mxu0 %v3788_v50  ;;  %2318 = vmatpush1.bf16.msra.mxu1 %v3790_v51  ;;  %v4164_v50 = vld [vmem:[#allocation16_spill] sm:$0xff] }
 0x6d4   : > { %2278 = vmatprep.subr.bf16.mxu0 %v3796_v52  ;;  %2319 = vmatprep.subr.bf16.mxu1 %v3798_v53  ;;  %v1705_v51 = vadd.f32 %v4164_v50, %v3960_v10 }
 0x6d7   : > { %2279 = vmatpush1.bf16.msra.mxu0 %v3800_v54  ;;  %2320 = vmatpush1.bf16.msra.mxu1 %v3802_v55 }
 0x6d8   : > { %2280 = vmatprep.subr.bf16.mxu0 %v3808_v56  ;;  %2321 = vmatprep.subr.bf16.mxu1 %v3810_v57 }
 0x6db   : > { %2281 = vmatpush1.bf16.msra.mxu0 %v3812_v58  ;;  %2322 = vmatpush1.bf16.msra.mxu1 %v3814_v59 }
 0x6dc   : > { %2282 = vmatprep.subr.bf16.mxu0 %v3820_v60  ;;  %2323 = vmatprep.subr.bf16.mxu1 %v3822_v61 }
 0x6df   : > { %2283 = vmatpush1.bf16.msra.mxu0 %v3824_v62  ;;  %2324 = vmatpush1.bf16.msra.mxu1 %v3826_v63 }
 0x6e0   : > { %2284 = vmatprep.subr.bf16.mxu0 %v3828_v0  ;;  %2325 = vmatprep.subr.bf16.mxu1 %v3832_v1 }
 0x6e3   : > { %2285 = vmatpush1.bf16.msra.mxu0 %v3836_v2  ;;  %2326 = vmatpush1.bf16.msra.mxu1 %v3838_v4 }
 0x6e4   : > { %2286 = vmatprep.subr.bf16.mxu0 %v3844_v32  ;;  %2327 = vmatprep.subr.bf16.mxu1 %v3846_v25 }
 0x6e7   : > { %2287 = vmatpush1.bf16.msra.mxu0 %v3848_v31  ;;  %2328 = vmatpush1.bf16.msra.mxu1 %v3850_v33 }
 0x6e8   : > { %2288 = vmatprep.subr.bf16.mxu0 %v3854_v46  ;;  %2329 = vmatprep.subr.bf16.mxu1 %v3856_v6 }
 0x6eb   : > { %2289 = vmatpush1.bf16.msra.mxu0 %v3860_v11  ;;  %2330 = vmatpush1.bf16.msra.mxu1 %v3862_v23 }
 0x7a1   : > { %v2193_v52 = vpop.f32.mrb[40].mxu0  ;;  %v2234_v53 = vpop.f32.mrb[40].mxu1 }
 0x7a2   : > { %v2241_v54 = vadd.f32 %v2193_v52, %v1650_v22  ;;  %v2243_v55 = vadd.f32 %v2234_v53, %v1703_v47  ;;  %v2195_v56 = vpop.f32.mrb[41].mxu0  ;;  %v2236_v57 = vpop.f32.mrb[41].mxu1 }
 0x7a3   : > { %v2242_v58 = vadd.f32 %v2195_v56, %v1652_v49  ;;  %v2244_v59 = vadd.f32 %v2236_v57, %v1705_v51  ;;  %v2197_v60 = vpop.f32.mrb[42].mxu0  ;;  %v2238_v61 = vpop.f32.mrb[42].mxu1  ;;  %v3193_v57 = vld [vmem:[%s4113_s5] sm:$0xff] (!%p2766_p10)  }
 0x7a4   : > { %v2760_v62 = vmul.f32 -1.442695, %v2241_v54  ;;  %v2198_v63 = vpop.f32.mrb[43].mxu0  ;;  %v2239_v0 = vpop.f32.mrb[43].mxu1  ;;  %v2762_v2 = vmul.f32 -1.442695, %v2243_v55 }
 0x7a5   : > { %v2761_v1 = vmul.f32 -1.442695, %v2242_v58  ;;  %v3324_v58 = vmov (!%p2766_p10), 0.0   ;;  %v3195_v60 = vld [vmem:[%s4113_s5 + $0x10] sm:$0xff] (!%p2766_p10)   ;;  %v3196_v61 = vld [vmem:[%s4113_s5 + $0x18] sm:$0xff] (!%p2766_p10)   ;;  %v3198_v63 = vld [vmem:[%s4113_s5 + $0x28] sm:$0xff] (!%p2766_p10)  }
 0x7a6   : > { %3161 = vpow2.f32 %v2760_v62  ;;  %2788 = vmatprep.subr.bf16.mxu0 (!%p2766_p10), %v3324_v58  ;;  %v3197_v62 = vld [vmem:[%s4113_s5 + $0x20] sm:$0xff] (!%p2766_p10)   ;;  %v3199_v0 = vld [vmem:[%s4113_s5 + $0x30] sm:$0xff] (!%p2766_p10)  }
 0x7a7   : > { %3163 = vpow2.f32 %v2761_v1  ;;  %v3200_v1 = vld [vmem:[%s4113_s5 + $0x38] sm:$0xff] (!%p2766_p10)  }
 0x7a8   : > { %3165 = vtanh.f32 %v2244_v59  ;;  %v3194_v59 = vld [vmem:[%s4113_s5 + $0x8] sm:$0xff] (!%p2766_p10)  }
 0x7a9   : > { %3167 = vpow2.f32 %v2762_v2 }
 0x7b0   : > { %v3162_v4 = vpop.eup %3161 }
 0x7b1   : > { %v2254_v32 = vadd.f32 1.0, %v3162_v4  ;;  %v3164_v25 = vpop.eup %3163  ;;  %v2767_v4 = vld [vmem:[%s4114_s6] ss:$0 sm:$0xff] (!%p2766_p10) }
 0x7b2   : > { %v2255_v31 = vadd.f32 1.0, %v3164_v25  ;;  %v3166_v33 = vpop.eup %3165 }
 0x7b3   : > { %3169 = vrcp.f32 %v2254_v32  ;;  %v3168_v46 = vpop.eup %3167 }
 0x7b4   : > { %3171 = vrcp.f32 %v2255_v31  ;;  %v2256_v19 = vadd.f32 1.0, %v3168_v46 }
 0x7b6   : > { %3173 = vrcp.f32 %v2256_v19 }
 0x7bd   : > { %v3170_v6 = vpop.eup %3169 }
 0x7be   : > { %v2265_v11 = vmul.f32 %v3170_v6, %v3166_v33  ;;  %v3172_v23 = vpop.eup %3171 }
 0x7bf   : > { %v2264_v29 = vmul.f32 %v3172_v23, %v4016_v27 }
 0x7c0   : > { %v3174_v43 = vpop.eup %3173 }
 0x7c1   : > { %v2266_v24 = vadd.f32 %v2265_v11, %v2264_v29 }
 0x7c3   : > { %3175 = vtanh.f32 %v2266_v24 }
 0x7cd   : > { %v3176_v26 = vpop.eup %3175 }
 0x7ce   : > { %v2268_v44 = vmul.f32 %v3176_v26, %v3174_v43 }
 0x7d0   : > { %v2273_v40 = vpack.c.bf16 %v2268_v44, %v2268_v44 }
 0x7d2   : > { %2307 = vmatmul.mubr.bf16.vlgmr.msra.gmra.mrb[44].mxu0 %v2273_v40  ;;  %2348 = vmatmul.mubr.bf16.vlgmr.msra.gmra.mrb[44].mxu1 %v2273_v40 }
 0x7d3   : > { %2789 = vmatpush3.bf16.msra.mxu0 (!%p2766_p10), %v3193_v57  ;;  %2804 = vmatprep.mubr.msk.bf16.mxu0 (!%p2766_p10), %vm3325_vm0, %v3324_v58 }
 0x7d4   : > { %2790 = vmatprep.subr.bf16.mxu0 (!%p2766_p10), %v3324_v58 }
 0x7d7   : > { %2791 = vmatpush3.bf16.msra.mxu0 (!%p2766_p10), %v3194_v59 }
 0x7d8   : > { %2792 = vmatprep.subr.bf16.mxu0 (!%p2766_p10), %v3324_v58 }
 0x7db   : > { %2793 = vmatpush3.bf16.msra.mxu0 (!%p2766_p10), %v3195_v60 }
 0x7dc   : > { %2794 = vmatprep.subr.bf16.mxu0 (!%p2766_p10), %v3324_v58 }
 0x7df   : > { %2795 = vmatpush3.bf16.msra.mxu0 (!%p2766_p10), %v3196_v61 }
 0x7e0   : > { %2796 = vmatprep.subr.bf16.mxu0 (!%p2766_p10), %v3324_v58 }
 0x7e3   : > { %2797 = vmatpush3.bf16.msra.mxu0 (!%p2766_p10), %v3197_v62 }
 0x7e4   : > { %2798 = vmatprep.subr.bf16.mxu0 (!%p2766_p10), %v3324_v58 }
 0x7e7   : > { %2799 = vmatpush3.bf16.msra.mxu0 (!%p2766_p10), %v3198_v63 }
 0x7e8   : > { %2800 = vmatprep.subr.bf16.mxu0 (!%p2766_p10), %v3324_v58 }
 0x7eb   : > { %2801 = vmatpush3.bf16.msra.mxu0 (!%p2766_p10), %v3199_v0 }
 0x7ec   : > { %2802 = vmatprep.subr.bf16.mxu0 (!%p2766_p10), %v3324_v58 }
 0x7ef   : > { %2803 = vmatpush3.bf16.msra.mxu0 (!%p2766_p10), %v3200_v1 }
 0x8a5   : > { %v2308_v13 = vpop.f32.mrb[44].mxu0  ;;  %v2349_v21 = vpop.f32.mrb[44].mxu1 }
 0x8a6   : > { %v2356_v20 = vadd.f32 %v2308_v13, %v1654_v3  ;;  %v2358_v7 = vadd.f32 %v2349_v21, %v1707_v36  ;;  %v2310_v30 = vpop.f32.mrb[45].mxu0  ;;  %v2351_v41 = vpop.f32.mrb[45].mxu1 }
 0x8a7   : > { %v2357_v8 = vadd.f32 %v2310_v30, %v1656_v35  ;;  %v2359_v5 = vadd.f32 %v2351_v41, %v1709_v12  ;;  %v2312_v18 = vpop.f32.mrb[46].mxu0  ;;  %v2353_v27 = vpop.f32.mrb[46].mxu1 }
 0x8a8   : > { %v2763_v37 = vmul.f32 -1.442695, %v2356_v20  ;;  %v2313_v42 = vpop.f32.mrb[47].mxu0  ;;  %v2354_v14 = vpop.f32.mrb[47].mxu1  ;;  %v2765_v15 = vmul.f32 -1.442695, %v2358_v7 }
 0x8a9   : > { %v2764_v38 = vmul.f32 -1.442695, %v2357_v8 }
 0x8aa   : > { %3177 = vpow2.f32 %v2763_v37 }
 0x8ab   : > { %3179 = vpow2.f32 %v2764_v38 }
 0x8ac   : > { %3181 = vtanh.f32 %v2359_v5 }
 0x8ad   : > { %3183 = vpow2.f32 %v2765_v15 }
 0x8b4   : > { %v3178_v16 = vpop.eup %3177 }
 0x8b5   : > { %v2369_v17 = vadd.f32 1.0, %v3178_v16  ;;  %v3180_v10 = vpop.eup %3179 }
 0x8b6   : > { %v2370_v22 = vadd.f32 1.0, %v3180_v10  ;;  %v3182_v45 = vpop.eup %3181 }
 0x8b7   : > { %3185 = vrcp.f32 %v2369_v17  ;;  %v3184_v47 = vpop.eup %3183 }
 0x8b8   : > { %3187 = vrcp.f32 %v2370_v22  ;;  %v2371_v51 = vadd.f32 1.0, %v3184_v47 }
 0x8ba   : > { %3189 = vrcp.f32 %v2371_v51 }
 0x8c1   : > { %v3186_v48 = vpop.eup %3185 }
 0x8c2   : > { %v2380_v49 = vmul.f32 %v3186_v48, %v3182_v45  ;;  %v3188_v50 = vpop.eup %3187 }
 0x8c3   : > { %v2379_v52 = vmul.f32 %v3188_v50, %v2266_v24 }
 0x8c4   : > { %v3190_v54 = vpop.eup %3189 }
 0x8c5   : > { %v2381_v53 = vadd.f32 %v2380_v49, %v2379_v52 }
 0x8c7   : > { %3191 = vtanh.f32 %v2381_v53  ;;  %2385 = vst [vmem:[#allocation3 + $0x8] sm:$0xff] %v2381_v53 }
 0x8ce   : > { %2389 = sbr.rel (%p2766_p10) target bundleno = 2477 (0x9ad), region = 68 }
 0x8d1   : > { %v3192_v55 = vpop.eup %3191 }
 0x8d2   : > { %v2383_v56 = vmul.f32 %v3192_v55, %v3190_v54 }
 0x8d4   : > { %2384 = vst [vmem:[#allocation2 + $0x8] sm:$0xff] %v2383_v56  ;;  %v2390_v2 = vpack.c.bf16 (!%p2766_p10), %v2383_v56, %v2383_v56 }
 0x8d6   : > { %2805 = vmatmul.mubr.bf16.vlgmr.msra.gmra.mrb[0].mxu0 %v2390_v2 }
 0x9a9   : > { %v2496_v32 = vpop.f32.mrb[0].mxu0 }
 0x9aa   : > { %v2497_v25 = vadd.f32 %v2767_v4, %v2496_v32  ;;  %v2806_v31 = vpop.f32.mrb[1].mxu0 }
 0x9ab   : > { %v2499_v33 = vpop.f32.mrb[2].mxu0 }
 0x9ac   : > { %2502 = vst [vmem:[%s4115_s7] sm:$0xff] %v2497_v25  ;;  %v2807_v46 = vpop.f32.mrb[3].mxu0 }
 0x9ad PF: > { %s19_s26 = sadd.s32 1, %s3315_s26   ;;  %s4169_s24 = smov %s3311_s25 }
 0x9ae   : > { %p16_p11 = scmp.ge.s32.totalorder %s19_s26, 4   ;;  %s4170_s25 = smov %s4172_s10 }
 0x9b0   :  { %18 = sbr.rel (!%p16_p11) target bundleno = 3 (0x3), region = 109 }
 0x9b7   :  { %2522 = vsyncpa [#allocation7], 1 }
 0x9b8   :  { %2524 = vsyncpa [#allocation7 + $0x1], 1 }
 0x9b9   :  { %2525 = vsyncpa [#allocation9], 1 }

</bundles_post_ra>
